<compile_context>
chip_gen: v6e
topology: v6e:2x2x1
jax: 0.10.0
libtpu: 0.0.40
codegen_flags: <defaults>
</compile_context>

<pallas_src>
import functools

import jax
import jax.numpy as jnp
from jax.experimental import pallas as pl
from jax.experimental.pallas import tpu as pltpu

_MXU_DTYPE = jnp.bfloat16        # matmul operand dtype (accumulate in f32)
_BN_EPS = 1e-5

# pltpu.CompilerParams on current JAX; TPUCompilerParams on some older releases.
_TPUCompilerParams = getattr(pltpu, "CompilerParams", None) or getattr(
    pltpu, "TPUCompilerParams")


# ------------------------------ small helpers -------------------------------

def _round_up(a, b):
    return (a + b - 1) // b * b


@functools.lru_cache(maxsize=1)
def _default_row_tile():
    # v7x has half the VMEM of v5e/v6e -> halve the row tile there.
    try:
        kind = jax.devices()[0].device_kind.lower()
    except Exception:
        return 512
    return 256 if "v7" in kind else 512


def _compiler_params():
    return _TPUCompilerParams(
        dimension_semantics=("parallel",),      # row tiles are independent
        vmem_limit_bytes=32 * 1024 * 1024,
    )


def _choose_tile(m):
    return min(_default_row_tile(), _round_up(m, 8))


def _pad_rows(x, mp):
    m = x.shape[0]
    if m == mp:
        return x
    return jnp.pad(x, ((0, mp - m), (0, 0)))


# ----------------------------- Pallas kernels ------------------------------

def _conv_stats_kernel(p_ref, w_ref, y_ref, s_ref):
    """im2col-matmul conv (bf16 operands, f32 accumulate) + per-tile BN partial
    statistics (sum, sum of squares).  Conv bias is omitted: train-mode
    BatchNorm mean subtraction cancels a per-channel bias exactly."""
    acc = jnp.dot(p_ref[...], w_ref[...], preferred_element_type=jnp.float32)
    y_ref[...] = acc
    ssum = jnp.sum(acc, axis=0, keepdims=True)          # (1, Cout)
    ssq = jnp.sum(acc * acc, axis=0, keepdims=True)     # (1, Cout)
    row = jax.lax.broadcasted_iota(jnp.int32, (8, acc.shape[1]), 0)
    s_ref[0] = jnp.where(row == 0, ssum, jnp.where(row == 1, ssq, 0.0))


def _bn_relu_kernel(y_ref, scale_ref, shift_ref, o_ref):
    """BatchNorm affine (pre-folded scale/shift) + ReLU, f32 elementwise."""
    o_ref[...] = jnp.maximum(y_ref[...] * scale_ref[...] + shift_ref[...], 0.0)


def _bn_relu_add_kernel(y_ref, scale_ref, shift_ref, skip_ref, o_ref):
    """Same as above with the residual add (post-ReLU, as in the module) fused."""
    y = jnp.maximum(y_ref[...] * scale_ref[...] + shift_ref[...], 0.0)
    o_ref[...] = y + skip_ref[...]


def _yolo_head_kernel(x_ref, w_ref, b_ref, o_ref, *, box_lo, box_hi, anchor):
    """1x1 conv (matmul) + bias + per-channel head activation.
    Channels [0, box_lo): sigmoid (classes, objectness, offsets);
    channels [box_lo, box_hi): exp(x) * anchor (boxes)."""
    acc = jnp.dot(x_ref[...].astype(_MXU_DTYPE), w_ref[...],
                  preferred_element_type=jnp.float32)
    acc = acc + b_ref[...]
    ch = jax.lax.broadcasted_iota(jnp.int32, acc.shape, 1)
    is_box = (ch >= box_lo) & (ch < box_hi)
    # Mask the exp() input so discarded (non-box) channels never produce inf.
    box = jnp.exp(jnp.where(is_box, acc, 0.0)) * anchor
    o_ref[...] = jnp.where(is_box, box, jax.nn.sigmoid(acc))


# ------------------------------ call wrappers -------------------------------

def conv3x3_bn_relu(x_nhwc, w_hwio, gamma, beta, stride, skip=None):
    """ZeroPad2d(1) + Conv2d(k=3, stride) + BatchNorm2d (train-mode batch
    stats) + ReLU [+ fused residual add], NHWC, row-tiled over N*Ho*Wo."""
    N, H, W, Cin = x_nhwc.shape
    Cout = w_hwio.shape[-1]
    xp = jnp.pad(x_nhwc, ((0, 0), (1, 1), (1, 1), (0, 0)))
    Ho = (H + 2 - 3) // stride + 1
    Wo = (W + 2 - 3) // stride + 1

    # TODO(synk): the 9x patch materialization (im2col) could be replaced by
    # halo-windowed in-kernel shifted dots; kept in the wrapper (fused by XLA
    # into a single bf16 buffer) for lowering robustness with stride-2 layers.
    cols = []
    for kh in range(3):
        for kw in range(3):
            cols.append(xp[:, kh:kh + stride * Ho:stride,
                           kw:kw + stride * Wo:stride, :])
    K = 9 * Cin
    M = N * Ho * Wo
    patches = jnp.concatenate(cols, axis=-1).reshape(M, K).astype(_MXU_DTYPE)
    wmat = w_hwio.reshape(K, Cout).astype(_MXU_DTYPE)

    tile = _choose_tile(M)
    Mp = _round_up(M, tile)
    T = Mp // tile
    patches = _pad_rows(patches, Mp)   # zero rows contribute 0 to sum / sumsq

    conv, stats = pl.pallas_call(
        _conv_stats_kernel,
        out_shape=(jax.ShapeDtypeStruct((Mp, Cout), jnp.float32),
                   jax.ShapeDtypeStruct((T, 8, Cout), jnp.float32)),
        grid=(T,),
        in_specs=[pl.BlockSpec((tile, K), lambda i: (i, 0)),
                  pl.BlockSpec((K, Cout), lambda i: (0, 0))],  # VMEM-resident
        out_specs=(pl.BlockSpec((tile, Cout), lambda i: (i, 0)),
                   pl.BlockSpec((1, 8, Cout), lambda i: (i, 0, 0))),
        compiler_params=_compiler_params(),
    )(patches, wmat)

    # Finalize BN statistics on Cout-length vectors (tiny) and fold gamma/beta
    # into one per-channel scale/shift pair for the second kernel.
    ssum = jnp.sum(stats[:, 0, :], axis=0)
    ssq = jnp.sum(stats[:, 1, :], axis=0)
    mean = ssum / M
    var = jnp.maximum(ssq / M - mean * mean, 0.0)   # biased var (train-mode BN)
    scale = gamma * jax.lax.rsqrt(var + _BN_EPS)
    shift = beta - mean * scale
    scale2d = scale.reshape(1, Cout).astype(jnp.float32)
    shift2d = shift.reshape(1, Cout).astype(jnp.float32)

    row_spec = pl.BlockSpec((tile, Cout), lambda i: (i, 0))
    vec_spec = pl.BlockSpec((1, Cout), lambda i: (0, 0))
    if skip is None:
        out = pl.pallas_call(
            _bn_relu_kernel,
            out_shape=jax.ShapeDtypeStruct((Mp, Cout), jnp.float32),
            grid=(T,),
            in_specs=[row_spec, vec_spec, vec_spec],
            out_specs=row_spec,
            compiler_params=_compiler_params(),
        )(conv, scale2d, shift2d)
    else:
        skip_rows = _pad_rows(skip.reshape(M, Cout), Mp)
        out = pl.pallas_call(
            _bn_relu_add_kernel,
            out_shape=jax.ShapeDtypeStruct((Mp, Cout), jnp.float32),
            grid=(T,),
            in_specs=[row_spec, vec_spec, vec_spec, row_spec],
            out_specs=row_spec,
            compiler_params=_compiler_params(),
        )(conv, scale2d, shift2d, skip_rows)
    return out[:M].reshape(N, Ho, Wo, Cout)


def yolo_last_conv(x_nhwc, w, b, n_classes, n_anchors, anchor):
    """Conv2d(k=1) + fused Yolo head activations, NHWC, row-tiled."""
    N, H, W, Cin = x_nhwc.shape
    Cout = w.shape[-1]
    M = N * H * W
    xm = x_nhwc.reshape(M, Cin)

    tile = _choose_tile(M)
    Mp = _round_up(M, tile)
    T = Mp // tile
    xm = _pad_rows(xm, Mp)

    box_lo = n_classes + 1 + 2 * n_anchors
    box_hi = box_lo + 2 * n_anchors
    kern = functools.partial(_yolo_head_kernel, box_lo=box_lo, box_hi=box_hi,
                             anchor=float(anchor))
    out = pl.pallas_call(
        kern,
        out_shape=jax.ShapeDtypeStruct((Mp, Cout), jnp.float32),
        grid=(T,),
        in_specs=[pl.BlockSpec((tile, Cin), lambda i: (i, 0)),
                  pl.BlockSpec((Cin, Cout), lambda i: (0, 0)),
                  pl.BlockSpec((1, Cout), lambda i: (0, 0))],
        out_specs=pl.BlockSpec((tile, Cout), lambda i: (i, 0)),
        compiler_params=_compiler_params(),
    )(xm, w.astype(_MXU_DTYPE), b.reshape(1, Cout).astype(jnp.float32))
    return out[:M].reshape(N, H, W, Cout)


# ------------------------------ Detector model ------------------------------

def detector_forward(params, x_nchw, conv_list,
                     n_classes=11, n_anchors=1, anchor_size=0.3, separate=True):
    x = jnp.transpose(x_nchw, (0, 2, 3, 1))  # NCHW -> NHWC

    # TODO(synk): the pretrained torchvision mobilenet_v2 `.features` backbone
    # cannot be loaded in-script; a single deterministic synthetic ConvLayer
    # (3x3, stride 2) stands in as the feature extractor.
    bb = params["backbone"]
    x = conv3x3_bn_relu(x, bb["w"], bb["gamma"], bb["beta"], stride=2)

    # Yolo head: ConvLayer stack; the residual add (post-ReLU, as in the
    # module) is fused into the BN/ReLU kernel when in==out and stride==1.
    for lp, (inc, _), (outc, stride) in zip(params["layers"],
                                            conv_list[:-1], conv_list[1:]):
        skip = x if (inc == outc and stride == 1) else None
        x = conv3x3_bn_relu(x, lp["w"], lp["gamma"], lp["beta"],
                            stride=stride, skip=skip)

    lc = params["last"]
    y = yolo_last_conv(x, lc["w"], lc["b"], n_classes, n_anchors, anchor_size)
    y = jnp.transpose(y, (0, 3, 1, 2))  # NHWC -> NCHW (PyTorch convention)

    tmp = n_classes + 1
    tmp2 = tmp + n_anchors * 2
    tmp3 = tmp2 + n_anchors * 2
    class_preds = y[:, :n_classes]
    objectness = y[:, n_classes:n_classes + 1]   # == unsqueeze(1)
    offsets = y[:, tmp:tmp2]
    boxes = y[:, tmp2:tmp3]
    if separate:
        return class_preds, objectness, offsets, boxes
    return jnp.concatenate((class_preds, objectness, offsets, boxes), axis=1)


def init_params(key, conv_list, in_ch, nc_last):
    keys = iter(jax.random.split(key, 64))

    def conv_params(cin, cout):
        # NOTE: no conv bias — with train-mode BatchNorm right after the conv
        # a per-channel bias is cancelled exactly by the mean subtraction.
        return dict(
            w=jax.random.normal(next(keys), (3, 3, cin, cout), jnp.float32) * 0.1,
            gamma=jnp.ones((cout,), jnp.float32),   # BatchNorm2d weight init
            beta=jnp.zeros((cout,), jnp.float32),   # BatchNorm2d bias init
        )

    params = {"backbone": conv_params(in_ch, conv_list[0][0]), "layers": []}
    for (cin, _), (cout, stride) in zip(conv_list[:-1], conv_list[1:]):
        params["layers"].append(conv_params(cin, cout))
    params["last"] = dict(
        w=jax.random.normal(next(keys), (conv_list[-1][0], nc_last),
                            jnp.float32) * 0.1,
        b=jax.random.normal(next(keys), (nc_last,), jnp.float32) * 0.05,
    )
    return params


# ----------------------------------- main ------------------------------------

if __name__ == "__main__":
    # Small, module-consistent shapes.
    N, C_IMG, H, W = 2, 3, 16, 16
    CONV_LIST = [(8, 1), (16, 2), (16, 1), (16, 1)]   # (channels, stride)
    N_CLASSES, N_ANCHORS = 11, 1
    LAST_KERNEL_DIM = N_CLASSES + 1 + 4 * N_ANCHORS   # = 16 channels out

    key = jax.random.PRNGKey(0)
    kx, kp = jax.random.split(key)
    x = jax.random.normal(kx, (N, C_IMG, H, W), jnp.float32)
    params = init_params(kp, CONV_LIST, in_ch=C_IMG, nc_last=LAST_KERNEL_DIM)

    fwd = jax.jit(functools.partial(detector_forward, conv_list=CONV_LIST,
                                    n_classes=N_CLASSES, n_anchors=N_ANCHORS))
    class_preds, objectness, offsets, boxes = fwd(params, x)
    jax.block_until_ready((class_preds, objectness, offsets, boxes))

    assert class_preds.shape == (N, N_CLASSES, 4, 4)
    assert objectness.shape == (N, 1, 4, 4)
    assert offsets.shape == (N, 2 * N_ANCHORS, 4, 4)
    assert boxes.shape == (N, 2 * N_ANCHORS, 4, 4)
    for t in (class_preds, objectness, offsets, boxes):
        assert bool(jnp.all(jnp.isfinite(t)))
    print("KERNEL_OK")
</pallas_src>

<mosaic_0001>
module attributes {stable_mosaic.version = 11 : i64} {
  func.func @_conv_stats_kernel(%arg0: i32, %arg1: memref<128x27xbf16, #tpu.memory_space<vmem>>, %arg2: memref<27x8xbf16, #tpu.memory_space<vmem>>, %arg3: memref<128x8xf32, #tpu.memory_space<vmem>>, %arg4: memref<1x8x8xf32, #tpu.memory_space<vmem>>) attributes {dimension_semantics = [#tpu.dimension_semantics<parallel>], iteration_bounds = array<i64: 1>, scalar_prefetch = 0 : i64, scratch_operands = 0 : i64, tpu.core_type = #tpu.core_type<tc>, window_params = [{transform_indices = @transform_0, window_bounds = array<i64: 128, 27>}, {pipeline_mode = #tpu.pipeline_mode<synchronous>, transform_indices = @transform_1, window_bounds = array<i64: 27, 8>}, {transform_indices = @transform_2, window_bounds = array<i64: 128, 8>}, {transform_indices = @transform_3, window_bounds = array<i64: 1, 8, 8>}]} {
    %c0 = arith.constant 0 : index
    %c0_0 = arith.constant 0 : index
    %0 = vector.load %arg1[%c0, %c0_0] : memref<128x27xbf16, #tpu.memory_space<vmem>>, vector<128x27xbf16>
    %c0_1 = arith.constant 0 : index
    %c0_2 = arith.constant 0 : index
    %1 = vector.load %arg2[%c0_1, %c0_2] : memref<27x8xbf16, #tpu.memory_space<vmem>>, vector<27x8xbf16>
    %cst = arith.constant dense<0.000000e+00> : vector<128x8xf32>
    %2 = tpu.matmul %0, %1, %cst {dimension_numbers = #tpu.dot_dimension_numbers<[1], [0], [0], [1], [0, 0, 1, 1], [], []>} : vector<128x27xbf16>, vector<27x8xbf16>, vector<128x8xf32> -> vector<128x8xf32>
    %c0_3 = arith.constant 0 : index
    %c0_4 = arith.constant 0 : index
    %3 = vector.load %arg3[%c0_3, %c0_4] : memref<128x8xf32, #tpu.memory_space<vmem>>, vector<128x8xf32>
    tpu.vector_store %arg3[%c0_3, %c0_4], %2 {strides = array<i32>} : memref<128x8xf32, #tpu.memory_space<vmem>>, vector<128x8xf32>,
    %cst_5 = arith.constant dense<0.000000e+00> : vector<8xf32>
    %4 = vector.multi_reduction <add>, %2, %cst_5 [0] : vector<128x8xf32> to vector<8xf32>
    %5 = vector.shape_cast %4 : vector<8xf32> to vector<1x8xf32>
    %6 = arith.mulf %2, %2 : vector<128x8xf32>
    %cst_6 = arith.constant dense<0.000000e+00> : vector<8xf32>
    %7 = vector.multi_reduction <add>, %6, %cst_6 [0] : vector<128x8xf32> to vector<8xf32>
    %8 = vector.shape_cast %7 : vector<8xf32> to vector<1x8xf32>
    %9 = tpu.iota {dimensions = array<i32: 0>} : vector<8x8xi32>
    %c0_i32 = arith.constant 0 : i32
    %10 = vector.broadcast %c0_i32 : i32 to vector<8x8xi32>
    %11 = arith.cmpi eq, %9, %10 : vector<8x8xi32>
    %c1_i32 = arith.constant 1 : i32
    %12 = vector.broadcast %c1_i32 : i32 to vector<8x8xi32>
    %13 = arith.cmpi eq, %9, %12 : vector<8x8xi32>
    %cst_7 = arith.constant 0.000000e+00 : f32
    %14 = vector.shape_cast %8 : vector<1x8xf32> to vector<1x8xf32>
    %15 = vector.broadcast %14 : vector<1x8xf32> to vector<8x8xf32>
    %16 = vector.broadcast %cst_7 : f32 to vector<8x8xf32>
    %17 = arith.select %13, %15, %16 : vector<8x8xi1>, vector<8x8xf32>
    %18 = vector.shape_cast %5 : vector<1x8xf32> to vector<1x8xf32>
    %19 = vector.broadcast %18 : vector<1x8xf32> to vector<8x8xf32>
    %20 = arith.select %11, %19, %17 : vector<8x8xi1>, vector<8x8xf32>
    %c0_8 = arith.constant 0 : index
    %c0_9 = arith.constant 0 : index
    %c0_10 = arith.constant 0 : index
    %21 = vector.load %arg4[%c0_8, %c0_9, %c0_10] : memref<1x8x8xf32, #tpu.memory_space<vmem>>, vector<1x8x8xf32>
    %22 = vector.shape_cast %21 : vector<1x8x8xf32> to vector<8x8xf32>
    %23 = vector.shape_cast %20 : vector<8x8xf32> to vector<1x8x8xf32>
    tpu.vector_store %arg4[%c0_8, %c0_9, %c0_10], %23 {strides = array<i32>} : memref<1x8x8xf32, #tpu.memory_space<vmem>>, vector<1x8x8xf32>,
    return
  }
  func.func @transform_0(%arg0: i32) -> (i32, i32) {
    %c0_i32 = arith.constant 0 : i32
    %c0_i32_0 = arith.constant 0 : i32
    return %arg0, %c0_i32 : i32, i32
  }
  func.func @transform_1(%arg0: i32) -> (i32, i32) {
    %c0_i32 = arith.constant 0 : i32
    %c0_i32_0 = arith.constant 0 : i32
    %c0_i32_1 = arith.constant 0 : i32
    return %c0_i32, %c0_i32_0 : i32, i32
  }
  func.func @transform_2(%arg0: i32) -> (i32, i32) {
    %c0_i32 = arith.constant 0 : i32
    %c0_i32_0 = arith.constant 0 : i32
    return %arg0, %c0_i32 : i32, i32
  }
  func.func @transform_3(%arg0: i32) -> (i32, i32, i32) {
    %c0_i32 = arith.constant 0 : i32
    %c0_i32_0 = arith.constant 0 : i32
    %c0_i32_1 = arith.constant 0 : i32
    return %arg0, %c0_i32, %c0_i32_0 : i32, i32, i32
  }
}

module attributes {stable_mosaic.version = 11 : i64} {
  func.func @_bn_relu_kernel(%arg0: i32, %arg1: memref<128x8xf32, #tpu.memory_space<vmem>>, %arg2: memref<1x8xf32, #tpu.memory_space<vmem>>, %arg3: memref<1x8xf32, #tpu.memory_space<vmem>>, %arg4: memref<128x8xf32, #tpu.memory_space<vmem>>) attributes {dimension_semantics = [#tpu.dimension_semantics<parallel>], iteration_bounds = array<i64: 1>, scalar_prefetch = 0 : i64, scratch_operands = 0 : i64, tpu.core_type = #tpu.core_type<tc>, window_params = [{transform_indices = @transform_0, window_bounds = array<i64: 128, 8>}, {pipeline_mode = #tpu.pipeline_mode<synchronous>, transform_indices = @transform_1, window_bounds = array<i64: 1, 8>}, {pipeline_mode = #tpu.pipeline_mode<synchronous>, transform_indices = @transform_2, window_bounds = array<i64: 1, 8>}, {transform_indices = @transform_3, window_bounds = array<i64: 128, 8>}]} {
    %c0 = arith.constant 0 : index
    %c0_0 = arith.constant 0 : index
    %0 = vector.load %arg1[%c0, %c0_0] : memref<128x8xf32, #tpu.memory_space<vmem>>, vector<128x8xf32>
    %c0_1 = arith.constant 0 : index
    %c0_2 = arith.constant 0 : index
    %1 = vector.load %arg2[%c0_1, %c0_2] : memref<1x8xf32, #tpu.memory_space<vmem>>, vector<1x8xf32>
    %2 = vector.broadcast %1 : vector<1x8xf32> to vector<128x8xf32>
    %3 = arith.mulf %0, %2 : vector<128x8xf32>
    %c0_3 = arith.constant 0 : index
    %c0_4 = arith.constant 0 : index
    %4 = vector.load %arg3[%c0_3, %c0_4] : memref<1x8xf32, #tpu.memory_space<vmem>>, vector<1x8xf32>
    %5 = vector.broadcast %4 : vector<1x8xf32> to vector<128x8xf32>
    %6 = arith.addf %3, %5 : vector<128x8xf32>
    %cst = arith.constant 0.000000e+00 : f32
    %7 = vector.broadcast %cst : f32 to vector<128x8xf32>
    %8 = arith.maximumf %6, %7 : vector<128x8xf32>
    %c0_5 = arith.constant 0 : index
    %c0_6 = arith.constant 0 : index
    %9 = vector.load %arg4[%c0_5, %c0_6] : memref<128x8xf32, #tpu.memory_space<vmem>>, vector<128x8xf32>
    tpu.vector_store %arg4[%c0_5, %c0_6], %8 {strides = array<i32>} : memref<128x8xf32, #tpu.memory_space<vmem>>, vector<128x8xf32>,
    return
  }
  func.func @transform_0(%arg0: i32) -> (i32, i32) {
    %c0_i32 = arith.constant 0 : i32
    %c0_i32_0 = arith.constant 0 : i32
    return %arg0, %c0_i32 : i32, i32
  }
  func.func @transform_1(%arg0: i32) -> (i32, i32) {
    %c0_i32 = arith.constant 0 : i32
    %c0_i32_0 = arith.constant 0 : i32
    %c0_i32_1 = arith.constant 0 : i32
    return %c0_i32, %c0_i32_0 : i32, i32
  }
  func.func @transform_2(%arg0: i32) -> (i32, i32) {
    %c0_i32 = arith.constant 0 : i32
    %c0_i32_0 = arith.constant 0 : i32
    %c0_i32_1 = arith.constant 0 : i32
    return %c0_i32, %c0_i32_0 : i32, i32
  }
  func.func @transform_3(%arg0: i32) -> (i32, i32) {
    %c0_i32 = arith.constant 0 : i32
    %c0_i32_0 = arith.constant 0 : i32
    return %arg0, %c0_i32 : i32, i32
  }
}

module attributes {stable_mosaic.version = 11 : i64} {
  func.func @_conv_stats_kernel(%arg0: i32, %arg1: memref<32x72xbf16, #tpu.memory_space<vmem>>, %arg2: memref<72x16xbf16, #tpu.memory_space<vmem>>, %arg3: memref<32x16xf32, #tpu.memory_space<vmem>>, %arg4: memref<1x8x16xf32, #tpu.memory_space<vmem>>) attributes {dimension_semantics = [#tpu.dimension_semantics<parallel>], iteration_bounds = array<i64: 1>, scalar_prefetch = 0 : i64, scratch_operands = 0 : i64, tpu.core_type = #tpu.core_type<tc>, window_params = [{transform_indices = @transform_0, window_bounds = array<i64: 32, 72>}, {pipeline_mode = #tpu.pipeline_mode<synchronous>, transform_indices = @transform_1, window_bounds = array<i64: 72, 16>}, {transform_indices = @transform_2, window_bounds = array<i64: 32, 16>}, {transform_indices = @transform_3, window_bounds = array<i64: 1, 8, 16>}]} {
    %c0 = arith.constant 0 : index
    %c0_0 = arith.constant 0 : index
    %0 = vector.load %arg1[%c0, %c0_0] : memref<32x72xbf16, #tpu.memory_space<vmem>>, vector<32x72xbf16>
    %c0_1 = arith.constant 0 : index
    %c0_2 = arith.constant 0 : index
    %1 = vector.load %arg2[%c0_1, %c0_2] : memref<72x16xbf16, #tpu.memory_space<vmem>>, vector<72x16xbf16>
    %cst = arith.constant dense<0.000000e+00> : vector<32x16xf32>
    %2 = tpu.matmul %0, %1, %cst {dimension_numbers = #tpu.dot_dimension_numbers<[1], [0], [0], [1], [0, 0, 1, 1], [], []>} : vector<32x72xbf16>, vector<72x16xbf16>, vector<32x16xf32> -> vector<32x16xf32>
    %c0_3 = arith.constant 0 : index
    %c0_4 = arith.constant 0 : index
    %3 = vector.load %arg3[%c0_3, %c0_4] : memref<32x16xf32, #tpu.memory_space<vmem>>, vector<32x16xf32>
    tpu.vector_store %arg3[%c0_3, %c0_4], %2 {strides = array<i32>} : memref<32x16xf32, #tpu.memory_space<vmem>>, vector<32x16xf32>,
    %cst_5 = arith.constant dense<0.000000e+00> : vector<16xf32>
    %4 = vector.multi_reduction <add>, %2, %cst_5 [0] : vector<32x16xf32> to vector<16xf32>
    %5 = vector.shape_cast %4 : vector<16xf32> to vector<1x16xf32>
    %6 = arith.mulf %2, %2 : vector<32x16xf32>
    %cst_6 = arith.constant dense<0.000000e+00> : vector<16xf32>
    %7 = vector.multi_reduction <add>, %6, %cst_6 [0] : vector<32x16xf32> to vector<16xf32>
    %8 = vector.shape_cast %7 : vector<16xf32> to vector<1x16xf32>
    %9 = tpu.iota {dimensions = array<i32: 0>} : vector<8x16xi32>
    %c0_i32 = arith.constant 0 : i32
    %10 = vector.broadcast %c0_i32 : i32 to vector<8x16xi32>
    %11 = arith.cmpi eq, %9, %10 : vector<8x16xi32>
    %c1_i32 = arith.constant 1 : i32
    %12 = vector.broadcast %c1_i32 : i32 to vector<8x16xi32>
    %13 = arith.cmpi eq, %9, %12 : vector<8x16xi32>
    %cst_7 = arith.constant 0.000000e+00 : f32
    %14 = vector.shape_cast %8 : vector<1x16xf32> to vector<1x16xf32>
    %15 = vector.broadcast %14 : vector<1x16xf32> to vector<8x16xf32>
    %16 = vector.broadcast %cst_7 : f32 to vector<8x16xf32>
    %17 = arith.select %13, %15, %16 : vector<8x16xi1>, vector<8x16xf32>
    %18 = vector.shape_cast %5 : vector<1x16xf32> to vector<1x16xf32>
    %19 = vector.broadcast %18 : vector<1x16xf32> to vector<8x16xf32>
    %20 = arith.select %11, %19, %17 : vector<8x16xi1>, vector<8x16xf32>
    %c0_8 = arith.constant 0 : index
    %c0_9 = arith.constant 0 : index
    %c0_10 = arith.constant 0 : index
    %21 = vector.load %arg4[%c0_8, %c0_9, %c0_10] : memref<1x8x16xf32, #tpu.memory_space<vmem>>, vector<1x8x16xf32>
    %22 = vector.shape_cast %21 : vector<1x8x16xf32> to vector<8x16xf32>
    %23 = vector.shape_cast %20 : vector<8x16xf32> to vector<1x8x16xf32>
    tpu.vector_store %arg4[%c0_8, %c0_9, %c0_10], %23 {strides = array<i32>} : memref<1x8x16xf32, #tpu.memory_space<vmem>>, vector<1x8x16xf32>,
    return
  }
  func.func @transform_0(%arg0: i32) -> (i32, i32) {
    %c0_i32 = arith.constant 0 : i32
    %c0_i32_0 = arith.constant 0 : i32
    return %arg0, %c0_i32 : i32, i32
  }
  func.func @transform_1(%arg0: i32) -> (i32, i32) {
    %c0_i32 = arith.constant 0 : i32
    %c0_i32_0 = arith.constant 0 : i32
    %c0_i32_1 = arith.constant 0 : i32
    return %c0_i32, %c0_i32_0 : i32, i32
  }
  func.func @transform_2(%arg0: i32) -> (i32, i32) {
    %c0_i32 = arith.constant 0 : i32
    %c0_i32_0 = arith.constant 0 : i32
    return %arg0, %c0_i32 : i32, i32
  }
  func.func @transform_3(%arg0: i32) -> (i32, i32, i32) {
    %c0_i32 = arith.constant 0 : i32
    %c0_i32_0 = arith.constant 0 : i32
    %c0_i32_1 = arith.constant 0 : i32
    return %arg0, %c0_i32, %c0_i32_0 : i32, i32, i32
  }
}

module attributes {stable_mosaic.version = 11 : i64} {
  func.func @_bn_relu_kernel(%arg0: i32, %arg1: memref<32x16xf32, #tpu.memory_space<vmem>>, %arg2: memref<1x16xf32, #tpu.memory_space<vmem>>, %arg3: memref<1x16xf32, #tpu.memory_space<vmem>>, %arg4: memref<32x16xf32, #tpu.memory_space<vmem>>) attributes {dimension_semantics = [#tpu.dimension_semantics<parallel>], iteration_bounds = array<i64: 1>, scalar_prefetch = 0 : i64, scratch_operands = 0 : i64, tpu.core_type = #tpu.core_type<tc>, window_params = [{transform_indices = @transform_0, window_bounds = array<i64: 32, 16>}, {pipeline_mode = #tpu.pipeline_mode<synchronous>, transform_indices = @transform_1, window_bounds = array<i64: 1, 16>}, {pipeline_mode = #tpu.pipeline_mode<synchronous>, transform_indices = @transform_2, window_bounds = array<i64: 1, 16>}, {transform_indices = @transform_3, window_bounds = array<i64: 32, 16>}]} {
    %c0 = arith.constant 0 : index
    %c0_0 = arith.constant 0 : index
    %0 = vector.load %arg1[%c0, %c0_0] : memref<32x16xf32, #tpu.memory_space<vmem>>, vector<32x16xf32>
    %c0_1 = arith.constant 0 : index
    %c0_2 = arith.constant 0 : index
    %1 = vector.load %arg2[%c0_1, %c0_2] : memref<1x16xf32, #tpu.memory_space<vmem>>, vector<1x16xf32>
    %2 = vector.broadcast %1 : vector<1x16xf32> to vector<32x16xf32>
    %3 = arith.mulf %0, %2 : vector<32x16xf32>
    %c0_3 = arith.constant 0 : index
    %c0_4 = arith.constant 0 : index
    %4 = vector.load %arg3[%c0_3, %c0_4] : memref<1x16xf32, #tpu.memory_space<vmem>>, vector<1x16xf32>
    %5 = vector.broadcast %4 : vector<1x16xf32> to vector<32x16xf32>
    %6 = arith.addf %3, %5 : vector<32x16xf32>
    %cst = arith.constant 0.000000e+00 : f32
    %7 = vector.broadcast %cst : f32 to vector<32x16xf32>
    %8 = arith.maximumf %6, %7 : vector<32x16xf32>
    %c0_5 = arith.constant 0 : index
    %c0_6 = arith.constant 0 : index
    %9 = vector.load %arg4[%c0_5, %c0_6] : memref<32x16xf32, #tpu.memory_space<vmem>>, vector<32x16xf32>
    tpu.vector_store %arg4[%c0_5, %c0_6], %8 {strides = array<i32>} : memref<32x16xf32, #tpu.memory_space<vmem>>, vector<32x16xf32>,
    return
  }
  func.func @transform_0(%arg0: i32) -> (i32, i32) {
    %c0_i32 = arith.constant 0 : i32
    %c0_i32_0 = arith.constant 0 : i32
    return %arg0, %c0_i32 : i32, i32
  }
  func.func @transform_1(%arg0: i32) -> (i32, i32) {
    %c0_i32 = arith.constant 0 : i32
    %c0_i32_0 = arith.constant 0 : i32
    %c0_i32_1 = arith.constant 0 : i32
    return %c0_i32, %c0_i32_0 : i32, i32
  }
  func.func @transform_2(%arg0: i32) -> (i32, i32) {
    %c0_i32 = arith.constant 0 : i32
    %c0_i32_0 = arith.constant 0 : i32
    %c0_i32_1 = arith.constant 0 : i32
    return %c0_i32, %c0_i32_0 : i32, i32
  }
  func.func @transform_3(%arg0: i32) -> (i32, i32) {
    %c0_i32 = arith.constant 0 : i32
    %c0_i32_0 = arith.constant 0 : i32
    return %arg0, %c0_i32 : i32, i32
  }
}

module attributes {stable_mosaic.version = 11 : i64} {
  func.func @_bn_relu_add_kernel(%arg0: i32, %arg1: memref<32x16xf32, #tpu.memory_space<vmem>>, %arg2: memref<1x16xf32, #tpu.memory_space<vmem>>, %arg3: memref<1x16xf32, #tpu.memory_space<vmem>>, %arg4: memref<32x16xf32, #tpu.memory_space<vmem>>, %arg5: memref<32x16xf32, #tpu.memory_space<vmem>>) attributes {dimension_semantics = [#tpu.dimension_semantics<parallel>], iteration_bounds = array<i64: 1>, scalar_prefetch = 0 : i64, scratch_operands = 0 : i64, tpu.core_type = #tpu.core_type<tc>, window_params = [{transform_indices = @transform_0, window_bounds = array<i64: 32, 16>}, {pipeline_mode = #tpu.pipeline_mode<synchronous>, transform_indices = @transform_1, window_bounds = array<i64: 1, 16>}, {pipeline_mode = #tpu.pipeline_mode<synchronous>, transform_indices = @transform_2, window_bounds = array<i64: 1, 16>}, {transform_indices = @transform_3, window_bounds = array<i64: 32, 16>}, {transform_indices = @transform_4, window_bounds = array<i64: 32, 16>}]} {
    %c0 = arith.constant 0 : index
    %c0_0 = arith.constant 0 : index
    %0 = vector.load %arg1[%c0, %c0_0] : memref<32x16xf32, #tpu.memory_space<vmem>>, vector<32x16xf32>
    %c0_1 = arith.constant 0 : index
    %c0_2 = arith.constant 0 : index
    %1 = vector.load %arg2[%c0_1, %c0_2] : memref<1x16xf32, #tpu.memory_space<vmem>>, vector<1x16xf32>
    %2 = vector.broadcast %1 : vector<1x16xf32> to vector<32x16xf32>
    %3 = arith.mulf %0, %2 : vector<32x16xf32>
    %c0_3 = arith.constant 0 : index
    %c0_4 = arith.constant 0 : index
    %4 = vector.load %arg3[%c0_3, %c0_4] : memref<1x16xf32, #tpu.memory_space<vmem>>, vector<1x16xf32>
    %5 = vector.broadcast %4 : vector<1x16xf32> to vector<32x16xf32>
    %6 = arith.addf %3, %5 : vector<32x16xf32>
    %cst = arith.constant 0.000000e+00 : f32
    %7 = vector.broadcast %cst : f32 to vector<32x16xf32>
    %8 = arith.maximumf %6, %7 : vector<32x16xf32>
    %c0_5 = arith.constant 0 : index
    %c0_6 = arith.constant 0 : index
    %9 = vector.load %arg4[%c0_5, %c0_6] : memref<32x16xf32, #tpu.memory_space<vmem>>, vector<32x16xf32>
    %10 = arith.addf %8, %9 : vector<32x16xf32>
    %c0_7 = arith.constant 0 : index
    %c0_8 = arith.constant 0 : index
    %11 = vector.load %arg5[%c0_7, %c0_8] : memref<32x16xf32, #tpu.memory_space<vmem>>, vector<32x16xf32>
    tpu.vector_store %arg5[%c0_7, %c0_8], %10 {strides = array<i32>} : memref<32x16xf32, #tpu.memory_space<vmem>>, vector<32x16xf32>,
    return
  }
  func.func @transform_0(%arg0: i32) -> (i32, i32) {
    %c0_i32 = arith.constant 0 : i32
    %c0_i32_0 = arith.constant 0 : i32
    return %arg0, %c0_i32 : i32, i32
  }
  func.func @transform_1(%arg0: i32) -> (i32, i32) {
    %c0_i32 = arith.constant 0 : i32
    %c0_i32_0 = arith.constant 0 : i32
    %c0_i32_1 = arith.constant 0 : i32
    return %c0_i32, %c0_i32_0 : i32, i32
  }
  func.func @transform_2(%arg0: i32) -> (i32, i32) {
    %c0_i32 = arith.constant 0 : i32
    %c0_i32_0 = arith.constant 0 : i32
    %c0_i32_1 = arith.constant 0 : i32
    return %c0_i32, %c0_i32_0 : i32, i32
  }
  func.func @transform_3(%arg0: i32) -> (i32, i32) {
    %c0_i32 = arith.constant 0 : i32
    %c0_i32_0 = arith.constant 0 : i32
    return %arg0, %c0_i32 : i32, i32
  }
  func.func @transform_4(%arg0: i32) -> (i32, i32) {
    %c0_i32 = arith.constant 0 : i32
    %c0_i32_0 = arith.constant 0 : i32
    return %arg0, %c0_i32 : i32, i32
  }
}

module attributes {stable_mosaic.version = 11 : i64} {
  func.func @_yolo_head_kernel(%arg0: i32, %arg1: memref<32x16xf32, #tpu.memory_space<vmem>>, %arg2: memref<16x16xbf16, #tpu.memory_space<vmem>>, %arg3: memref<1x16xf32, #tpu.memory_space<vmem>>, %arg4: memref<32x16xf32, #tpu.memory_space<vmem>>) attributes {dimension_semantics = [#tpu.dimension_semantics<parallel>], iteration_bounds = array<i64: 1>, scalar_prefetch = 0 : i64, scratch_operands = 0 : i64, tpu.core_type = #tpu.core_type<tc>, window_params = [{transform_indices = @transform_0, window_bounds = array<i64: 32, 16>}, {pipeline_mode = #tpu.pipeline_mode<synchronous>, transform_indices = @transform_1, window_bounds = array<i64: 16, 16>}, {pipeline_mode = #tpu.pipeline_mode<synchronous>, transform_indices = @transform_2, window_bounds = array<i64: 1, 16>}, {transform_indices = @transform_3, window_bounds = array<i64: 32, 16>}]} {
    %c0 = arith.constant 0 : index
    %c0_0 = arith.constant 0 : index
    %0 = vector.load %arg1[%c0, %c0_0] : memref<32x16xf32, #tpu.memory_space<vmem>>, vector<32x16xf32>
    %1 = arith.truncf %0 : vector<32x16xf32> to vector<32x16xbf16>
    %c0_1 = arith.constant 0 : index
    %c0_2 = arith.constant 0 : index
    %2 = vector.load %arg2[%c0_1, %c0_2] : memref<16x16xbf16, #tpu.memory_space<vmem>>, vector<16x16xbf16>
    %cst = arith.constant dense<0.000000e+00> : vector<32x16xf32>
    %3 = tpu.matmul %1, %2, %cst {dimension_numbers = #tpu.dot_dimension_numbers<[1], [0], [0], [1], [0, 0, 1, 1], [], []>} : vector<32x16xbf16>, vector<16x16xbf16>, vector<32x16xf32> -> vector<32x16xf32>
    %c0_3 = arith.constant 0 : index
    %c0_4 = arith.constant 0 : index
    %4 = vector.load %arg3[%c0_3, %c0_4] : memref<1x16xf32, #tpu.memory_space<vmem>>, vector<1x16xf32>
    %5 = vector.broadcast %4 : vector<1x16xf32> to vector<32x16xf32>
    %6 = arith.addf %3, %5 : vector<32x16xf32>
    %7 = tpu.iota {dimensions = array<i32: 1>} : vector<32x16xi32>
    %c14_i32 = arith.constant 14 : i32
    %8 = vector.broadcast %c14_i32 : i32 to vector<32x16xi32>
    %9 = arith.cmpi sge, %7, %8 : vector<32x16xi32>
    %c16_i32 = arith.constant 16 : i32
    %10 = vector.broadcast %c16_i32 : i32 to vector<32x16xi32>
    %11 = arith.cmpi slt, %7, %10 : vector<32x16xi32>
    %12 = arith.andi %9, %11 : vector<32x16xi1>
    %cst_5 = arith.constant 0.000000e+00 : f32
    %13 = vector.broadcast %cst_5 : f32 to vector<32x16xf32>
    %14 = arith.select %12, %6, %13 : vector<32x16xi1>, vector<32x16xf32>
    %15 = math.exp %14 : vector<32x16xf32>
    %cst_6 = arith.constant 3.000000e-01 : f32
    %16 = vector.broadcast %cst_6 : f32 to vector<32x16xf32>
    %17 = arith.mulf %15, %16 : vector<32x16xf32>
    %18 = arith.negf %6 : vector<32x16xf32>
    %19 = math.exp %18 : vector<32x16xf32>
    %cst_7 = arith.constant 1.000000e+00 : f32
    %20 = vector.broadcast %cst_7 : f32 to vector<32x16xf32>
    %21 = arith.addf %20, %19 : vector<32x16xf32>
    %22 = arith.divf %20, %21 : vector<32x16xf32>
    %23 = arith.select %12, %17, %22 : vector<32x16xi1>, vector<32x16xf32>
    %c0_8 = arith.constant 0 : index
    %c0_9 = arith.constant 0 : index
    %24 = vector.load %arg4[%c0_8, %c0_9] : memref<32x16xf32, #tpu.memory_space<vmem>>, vector<32x16xf32>
    tpu.vector_store %arg4[%c0_8, %c0_9], %23 {strides = array<i32>} : memref<32x16xf32, #tpu.memory_space<vmem>>, vector<32x16xf32>,
    return
  }
  func.func @transform_0(%arg0: i32) -> (i32, i32) {
    %c0_i32 = arith.constant 0 : i32
    %c0_i32_0 = arith.constant 0 : i32
    return %arg0, %c0_i32 : i32, i32
  }
  func.func @transform_1(%arg0: i32) -> (i32, i32) {
    %c0_i32 = arith.constant 0 : i32
    %c0_i32_0 = arith.constant 0 : i32
    %c0_i32_1 = arith.constant 0 : i32
    return %c0_i32, %c0_i32_0 : i32, i32
  }
  func.func @transform_2(%arg0: i32) -> (i32, i32) {
    %c0_i32 = arith.constant 0 : i32
    %c0_i32_0 = arith.constant 0 : i32
    %c0_i32_1 = arith.constant 0 : i32
    return %c0_i32, %c0_i32_0 : i32, i32
  }
  func.func @transform_3(%arg0: i32) -> (i32, i32) {
    %c0_i32 = arith.constant 0 : i32
    %c0_i32_0 = arith.constant 0 : i32
    return %arg0, %c0_i32 : i32, i32
  }
}

module attributes {stable_mosaic.version = 11 : i64} {
  func.func @_conv_stats_kernel(%arg0: i32, %arg1: memref<32x144xbf16, #tpu.memory_space<vmem>>, %arg2: memref<144x16xbf16, #tpu.memory_space<vmem>>, %arg3: memref<32x16xf32, #tpu.memory_space<vmem>>, %arg4: memref<1x8x16xf32, #tpu.memory_space<vmem>>) attributes {dimension_semantics = [#tpu.dimension_semantics<parallel>], iteration_bounds = array<i64: 1>, scalar_prefetch = 0 : i64, scratch_operands = 0 : i64, tpu.core_type = #tpu.core_type<tc>, window_params = [{transform_indices = @transform_0, window_bounds = array<i64: 32, 144>}, {pipeline_mode = #tpu.pipeline_mode<synchronous>, transform_indices = @transform_1, window_bounds = array<i64: 144, 16>}, {transform_indices = @transform_2, window_bounds = array<i64: 32, 16>}, {transform_indices = @transform_3, window_bounds = array<i64: 1, 8, 16>}]} {
    %c0 = arith.constant 0 : index
    %c0_0 = arith.constant 0 : index
    %0 = vector.load %arg1[%c0, %c0_0] : memref<32x144xbf16, #tpu.memory_space<vmem>>, vector<32x144xbf16>
    %c0_1 = arith.constant 0 : index
    %c0_2 = arith.constant 0 : index
    %1 = vector.load %arg2[%c0_1, %c0_2] : memref<144x16xbf16, #tpu.memory_space<vmem>>, vector<144x16xbf16>
    %cst = arith.constant dense<0.000000e+00> : vector<32x16xf32>
    %2 = tpu.matmul %0, %1, %cst {dimension_numbers = #tpu.dot_dimension_numbers<[1], [0], [0], [1], [0, 0, 1, 1], [], []>} : vector<32x144xbf16>, vector<144x16xbf16>, vector<32x16xf32> -> vector<32x16xf32>
    %c0_3 = arith.constant 0 : index
    %c0_4 = arith.constant 0 : index
    %3 = vector.load %arg3[%c0_3, %c0_4] : memref<32x16xf32, #tpu.memory_space<vmem>>, vector<32x16xf32>
    tpu.vector_store %arg3[%c0_3, %c0_4], %2 {strides = array<i32>} : memref<32x16xf32, #tpu.memory_space<vmem>>, vector<32x16xf32>,
    %cst_5 = arith.constant dense<0.000000e+00> : vector<16xf32>
    %4 = vector.multi_reduction <add>, %2, %cst_5 [0] : vector<32x16xf32> to vector<16xf32>
    %5 = vector.shape_cast %4 : vector<16xf32> to vector<1x16xf32>
    %6 = arith.mulf %2, %2 : vector<32x16xf32>
    %cst_6 = arith.constant dense<0.000000e+00> : vector<16xf32>
    %7 = vector.multi_reduction <add>, %6, %cst_6 [0] : vector<32x16xf32> to vector<16xf32>
    %8 = vector.shape_cast %7 : vector<16xf32> to vector<1x16xf32>
    %9 = tpu.iota {dimensions = array<i32: 0>} : vector<8x16xi32>
    %c0_i32 = arith.constant 0 : i32
    %10 = vector.broadcast %c0_i32 : i32 to vector<8x16xi32>
    %11 = arith.cmpi eq, %9, %10 : vector<8x16xi32>
    %c1_i32 = arith.constant 1 : i32
    %12 = vector.broadcast %c1_i32 : i32 to vector<8x16xi32>
    %13 = arith.cmpi eq, %9, %12 : vector<8x16xi32>
    %cst_7 = arith.constant 0.000000e+00 : f32
    %14 = vector.shape_cast %8 : vector<1x16xf32> to vector<1x16xf32>
    %15 = vector.broadcast %14 : vector<1x16xf32> to vector<8x16xf32>
    %16 = vector.broadcast %cst_7 : f32 to vector<8x16xf32>
    %17 = arith.select %13, %15, %16 : vector<8x16xi1>, vector<8x16xf32>
    %18 = vector.shape_cast %5 : vector<1x16xf32> to vector<1x16xf32>
    %19 = vector.broadcast %18 : vector<1x16xf32> to vector<8x16xf32>
    %20 = arith.select %11, %19, %17 : vector<8x16xi1>, vector<8x16xf32>
    %c0_8 = arith.constant 0 : index
    %c0_9 = arith.constant 0 : index
    %c0_10 = arith.constant 0 : index
    %21 = vector.load %arg4[%c0_8, %c0_9, %c0_10] : memref<1x8x16xf32, #tpu.memory_space<vmem>>, vector<1x8x16xf32>
    %22 = vector.shape_cast %21 : vector<1x8x16xf32> to vector<8x16xf32>
    %23 = vector.shape_cast %20 : vector<8x16xf32> to vector<1x8x16xf32>
    tpu.vector_store %arg4[%c0_8, %c0_9, %c0_10], %23 {strides = array<i32>} : memref<1x8x16xf32, #tpu.memory_space<vmem>>, vector<1x8x16xf32>,
    return
  }
  func.func @transform_0(%arg0: i32) -> (i32, i32) {
    %c0_i32 = arith.constant 0 : i32
    %c0_i32_0 = arith.constant 0 : i32
    return %arg0, %c0_i32 : i32, i32
  }
  func.func @transform_1(%arg0: i32) -> (i32, i32) {
    %c0_i32 = arith.constant 0 : i32
    %c0_i32_0 = arith.constant 0 : i32
    %c0_i32_1 = arith.constant 0 : i32
    return %c0_i32, %c0_i32_0 : i32, i32
  }
  func.func @transform_2(%arg0: i32) -> (i32, i32) {
    %c0_i32 = arith.constant 0 : i32
    %c0_i32_0 = arith.constant 0 : i32
    return %arg0, %c0_i32 : i32, i32
  }
  func.func @transform_3(%arg0: i32) -> (i32, i32, i32) {
    %c0_i32 = arith.constant 0 : i32
    %c0_i32_0 = arith.constant 0 : i32
    %c0_i32_1 = arith.constant 0 : i32
    return %arg0, %c0_i32, %c0_i32_0 : i32, i32, i32
  }
}

</mosaic_0001>

<bundles_post_ra>
// kernel: detector_forward.10
= control target key start
LH: loop header
LB: loop body
LE: loop exit
PB: predicated region body
PF: predicated region fallthrough
CT: control target
= control target key end

     0   :  { %vm92_vm0 = vcmask 64512   ;;  %s271_s0 = inlined_call_operand.vmem [shape: f32[128,8], index: 0, kind: input, shape index: {}]   ;;  %s272_s1 = inlined_call_operand.vmem [shape: f32[1,8], index: 1, kind: input, shape index: {}]   ;;  %s273_s2 = inlined_call_operand.vmem [shape: f32[1,8], index: 2, kind: input, shape index: {}]   ;;  %s274_s3 = inlined_call_operand.vmem [shape: f32[128,8], index: 3, kind: output, shape index: {}]  }
   0x1   :  { %v14_v0 = vld [vmem:[%s271_s0] sm:$0xff]  ;;  %v15_v4 = vld [vmem:[%s271_s0 + $0x8] sm:$0xff]  ;;  %v16_v5 = vld [vmem:[%s271_s0 + $0x10] sm:$0xff] }
   0x2   :  { %v113_v1 = vld [vmem:[%s272_s1] ss:$0 sm:$0xff]  ;;  %v17_v6 = vld [vmem:[%s271_s0 + $0x18] sm:$0xff]  ;;  %v19_v11 = vld [vmem:[%s271_s0 + $0x28] sm:$0xff] }
   0x3   :  { %v144_v2 = vld [vmem:[%s273_s2] ss:$0 sm:$0xff]  ;;  %v37_v3 = vmul.f32 %v113_v1, %v14_v0  ;;  %v38_v7 = vmul.f32 %v113_v1, %v15_v4  ;;  %v39_v8 = vmul.f32 %v113_v1, %v16_v5  ;;  %v40_v9 = vmul.f32 %v113_v1, %v17_v6  ;;  %v20_v12 = vld [vmem:[%s271_s0 + $0x30] sm:$0xff]  ;;  %v21_v17 = vld [vmem:[%s271_s0 + $0x38] sm:$0xff] }
   0x4   :  { %v18_v10 = vld [vmem:[%s271_s0 + $0x20] sm:$0xff]  ;;  %v42_v15 = vmul.f32 %v113_v1, %v19_v11  ;;  %v43_v16 = vmul.f32 %v113_v1, %v20_v12  ;;  %v44_v21 = vmul.f32 %v113_v1, %v21_v17  ;;  %v23_v27 = vld [vmem:[%s271_s0 + $0x48] sm:$0xff]  ;;  %v24_v28 = vld [vmem:[%s271_s0 + $0x50] sm:$0xff] }
   0x5   :  { %v60_v13 = vadd.f32 %v144_v2, %v37_v3  ;;  %v41_v14 = vmul.f32 %v113_v1, %v18_v10  ;;  %v61_v18 = vadd.f32 %v144_v2, %v38_v7  ;;  %v62_v19 = vadd.f32 %v144_v2, %v39_v8  ;;  %v22_v22 = vld [vmem:[%s271_s0 + $0x40] sm:$0xff]  ;;  %v25_v29 = vld [vmem:[%s271_s0 + $0x58] sm:$0xff]  ;;  %v27_v35 = vld [vmem:[%s271_s0 + $0x68] sm:$0xff] }
   0x6   :  { %v63_v20 = vadd.f32 %v144_v2, %v40_v9  ;;  %v65_v25 = vadd.f32 %v144_v2, %v42_v15  ;;  %v66_v26 = vadd.f32 %v144_v2, %v43_v16  ;;  %v67_v33 = vadd.f32 %v144_v2, %v44_v21  ;;  %v26_v34 = vld [vmem:[%s271_s0 + $0x60] sm:$0xff]  ;;  %v28_v36 = vld [vmem:[%s271_s0 + $0x70] sm:$0xff]  ;;  %v29_v41 = vld [vmem:[%s271_s0 + $0x78] sm:$0xff] }
   0x7   :  { %v76_v23 = vmax.f32 %v60_v13, 0.0  ;;  %v64_v24 = vadd.f32 %v144_v2, %v41_v14  ;;  %v77_v30 = vmax.f32 %v61_v18, 0.0  ;;  %v78_v31 = vmax.f32 %v62_v19, 0.0 }
   0x8   :  { %v79_v32 = vmax.f32 %v63_v20, 0.0  ;;  %v81_v38 = vmax.f32 %v65_v25, 0.0  ;;  %v82_v39 = vmax.f32 %v66_v26, 0.0  ;;  %v45_v40 = vmul.f32 %v113_v1, %v22_v22 }
   0x9   :  { %93 = vst.msk [vmem:[%s274_s3] sm:$0xff] %vm92_vm0, %v76_v23  ;;  %v80_v37 = vmax.f32 %v64_v24, 0.0  ;;  %94 = vst.msk [vmem:[%s274_s3 + $0x8] sm:$0xff] %vm92_vm0, %v77_v30  ;;  %v83_v42 = vmax.f32 %v67_v33, 0.0  ;;  %v46_v43 = vmul.f32 %v113_v1, %v23_v27  ;;  %v47_v44 = vmul.f32 %v113_v1, %v24_v28 }
   0xa   :  { %95 = vst.msk [vmem:[%s274_s3 + $0x10] sm:$0xff] %vm92_vm0, %v78_v31  ;;  %96 = vst.msk [vmem:[%s274_s3 + $0x18] sm:$0xff] %vm92_vm0, %v79_v32  ;;  %v48_v45 = vmul.f32 %v113_v1, %v25_v29  ;;  %v68_v46 = vadd.f32 %v144_v2, %v45_v40  ;;  %v49_v47 = vmul.f32 %v113_v1, %v26_v34 }
   0xb   :  { %97 = vst.msk [vmem:[%s274_s3 + $0x20] sm:$0xff] %vm92_vm0, %v80_v37  ;;  %98 = vst.msk [vmem:[%s274_s3 + $0x28] sm:$0xff] %vm92_vm0, %v81_v38  ;;  %v50_v48 = vmul.f32 %v113_v1, %v27_v35  ;;  %v51_v49 = vmul.f32 %v113_v1, %v28_v36  ;;  %v69_v50 = vadd.f32 %v144_v2, %v46_v43 }
   0xc   :  { %99 = vst.msk [vmem:[%s274_s3 + $0x30] sm:$0xff] %vm92_vm0, %v82_v39  ;;  %100 = vst.msk [vmem:[%s274_s3 + $0x38] sm:$0xff] %vm92_vm0, %v83_v42  ;;  %v70_v51 = vadd.f32 %v144_v2, %v47_v44  ;;  %v71_v52 = vadd.f32 %v144_v2, %v48_v45  ;;  %v52_v53 = vmul.f32 %v113_v1, %v29_v41  ;;  %v84_v54 = vmax.f32 %v68_v46, 0.0 }
   0xd   :  { %v72_v55 = vadd.f32 %v144_v2, %v49_v47  ;;  %v73_v56 = vadd.f32 %v144_v2, %v50_v48  ;;  %v74_v57 = vadd.f32 %v144_v2, %v51_v49  ;;  %v85_v58 = vmax.f32 %v69_v50, 0.0 }
   0xe   :  { %v86_v59 = vmax.f32 %v70_v51, 0.0  ;;  %v87_v60 = vmax.f32 %v71_v52, 0.0  ;;  %v75_v61 = vadd.f32 %v144_v2, %v52_v53  ;;  %101 = vst.msk [vmem:[%s274_s3 + $0x40] sm:$0xff] %vm92_vm0, %v84_v54 }
   0xf   :  { %v88_v62 = vmax.f32 %v72_v55, 0.0  ;;  %v89_v63 = vmax.f32 %v73_v56, 0.0  ;;  %v90_v0 = vmax.f32 %v74_v57, 0.0  ;;  %102 = vst.msk [vmem:[%s274_s3 + $0x48] sm:$0xff] %vm92_vm0, %v85_v58 }
  0x10   :  { %103 = vst.msk [vmem:[%s274_s3 + $0x50] sm:$0xff] %vm92_vm0, %v86_v59  ;;  %104 = vst.msk [vmem:[%s274_s3 + $0x58] sm:$0xff] %vm92_vm0, %v87_v60  ;;  %v91_v1 = vmax.f32 %v75_v61, 0.0 }
  0x11   :  { %105 = vst.msk [vmem:[%s274_s3 + $0x60] sm:$0xff] %vm92_vm0, %v88_v62  ;;  %106 = vst.msk [vmem:[%s274_s3 + $0x68] sm:$0xff] %vm92_vm0, %v89_v63 }
  0x12   :  { %107 = vst.msk [vmem:[%s274_s3 + $0x70] sm:$0xff] %vm92_vm0, %v90_v0  ;;  %108 = vst.msk [vmem:[%s274_s3 + $0x78] sm:$0xff] %vm92_vm0, %v91_v1 }

// kernel: detector_forward.9
= control target key start
LH: loop header
LB: loop body
LE: loop exit
PB: predicated region body
PF: predicated region fallthrough
CT: control target
= control target key end

     0   :  { %vm110_vm0 = vcmask 1044480   ;;  %vm111_vm1 = vcmask 1045504   ;;  %v399_v1 = vmov 65535   ;;  %vm85_vm2 = vcmask 220160   ;;  %s588_s1 = inlined_call_operand.vmem [shape: bf16[27,8], index: 1, kind: input, shape index: {}]   ;;  %s589_s0 = inlined_call_operand.vmem [shape: bf16[128,27], index: 0, kind: input, shape index: {}]   ;;  %s590_s2 = inlined_call_operand.vmem [shape: f32[128,8], index: 2, kind: output, shape index: {0}]   ;;  %s591_s3 = inlined_call_operand.vmem [shape: f32[1,8,8], index: 3, kind: output, shape index: {1}]  }
   0x1   :  { %v389_v0 = vld [vmem:[%s588_s1 + $0x8] sm:$0x3f]   ;;  %v112_v2 = vsel %vm110_vm0, 4294967295, %v399_v1  ;;  %v391_v4 = vld [vmem:[%s589_s0] sm:$0xff]   ;;  %v393_v10 = vld [vmem:[%s589_s0 + $0x10] sm:$0xff]   ;;  %vm214_vm3 = vcmask 64512  }
   0x2   :  { %v113_v3 = vsel %vm111_vm1, %v112_v2, 0  ;;  %v390_v6 = vld [vmem:[%s588_s1] sm:$0xff]   ;;  %368 = vmatprep.mubr.msk.bf16.mxu0 %vm85_vm2, %v391_v4  ;;  %v392_v8 = vld [vmem:[%s589_s0 + $0x8] sm:$0xff]   ;;  %v397_v11 = vld [vmem:[%s589_s0 + $0x30] sm:$0xff]  }
   0x3   :  { %v115_v5 = vand.u32 %v389_v0, %v113_v3  ;;  %v395_v7 = vld [vmem:[%s589_s0 + $0x20] sm:$0xff]   ;;  %v396_v9 = vld [vmem:[%s589_s0 + $0x28] sm:$0xff]   ;;  %v394_v12 = vld [vmem:[%s589_s0 + $0x18] sm:$0xff]  }
   0x4   :  { %376 = vmatprep.mubr.msk.bf16.mxu1 %vm85_vm2, %v395_v7  ;;  %v398_v13 = vld [vmem:[%s589_s0 + $0x38] sm:$0xff]  }
   0x5   :  { %364 = vmatprep.subr.bf16.mxu0 %v115_v5  ;;  %384 = vmatprep.subr.bf16.mxu1 %v115_v5 }
   0x6   :  { %365 = vmatpush3.bf16.msra.mxu0 %v115_v5  ;;  %386 = vmatpush3.bf16.msra.mxu1 %v115_v5 }
   0x7   :  { %366 = vmatprep.subr.bf16.mxu0 %v390_v6  ;;  %385 = vmatprep.subr.bf16.mxu1 %v390_v6 }
   0xa   :  { %367 = vmatpush3.bf16.msra.mxu0 %v390_v6  ;;  %387 = vmatpush3.bf16.msra.mxu1 %v390_v6 }
   0xd   :  { %369 = vmatmul.mubr.msk.bf16.vlgmr.msra.gmra.mxu0 %vm85_vm2, %v392_v8  ;;  %377 = vmatmul.mubr.msk.bf16.vlgmr.msra.gmra.mxu1 %vm85_vm2, %v396_v9 }
   0xe   :  { %372 = vmatprep.mubr.msk.bf16.mxu0 %vm85_vm2, %v393_v10  ;;  %380 = vmatprep.mubr.msk.bf16.mxu1 %vm85_vm2, %v397_v11 }
  0x15   :  { %373 = vmatmul.mubr.msk.bf16.gmra.mxu0 %vm85_vm2, %v394_v12  ;;  %381 = vmatmul.mubr.msk.bf16.gmra.mxu1 %vm85_vm2, %v398_v13 }
  0xcd   :  { %v370_v14 = vpop.f32.mrf.mxu0  ;;  %v458_v15 = vpop.f32.mrf.mxu1 }
  0xce   :  { %217 = vst.msk [vmem:[%s590_s2 + $0x10] sm:$0xff] %vm214_vm3, %v370_v14  ;;  %225 = vst.msk [vmem:[%s590_s2 + $0x50] sm:$0xff] %vm214_vm3, %v458_v15  ;;  %v270_v23 = vmul.f32 %v370_v14, %v370_v14  ;;  %v234_v30 = vsel %vm214_vm3, %v370_v14, 0.0  ;;  %v278_v8 = vmul.f32 %v458_v15, %v458_v15  ;;  %v250_v13 = vsel %vm214_vm3, %v458_v15, 0.0 }
  0xcf   :  { %v151_v16 = vpop.f32.mrf.mxu0  ;;  %v469_v17 = vpop.f32.mrf.mxu1 }
  0xd0   :  { %215 = vst.msk [vmem:[%s590_s2] sm:$0xff] %vm214_vm3, %v151_v16  ;;  %223 = vst.msk [vmem:[%s590_s2 + $0x40] sm:$0xff] %vm214_vm3, %v469_v17  ;;  %v268_v20 = vmul.f32 %v151_v16, %v151_v16  ;;  %v231_v24 = vsel %vm214_vm3, %v151_v16, 0.0  ;;  %v287_v38 = vsel %vm214_vm3, %v270_v23, 0.0  ;;  %v276_v0 = vmul.f32 %v469_v17, %v469_v17 }
  0xd1   :  { %v371_v18 = vpop.f32.mrf.mxu0  ;;  %v480_v19 = vpop.f32.mrf.mxu1  ;;  %v246_v4 = vsel %vm214_vm3, %v469_v17, 0.0 }
  0xd2   :  { %218 = vst.msk [vmem:[%s590_s2 + $0x18] sm:$0xff] %vm214_vm3, %v371_v18  ;;  %226 = vst.msk [vmem:[%s590_s2 + $0x58] sm:$0xff] %vm214_vm3, %v480_v19  ;;  %v284_v31 = vsel %vm214_vm3, %v268_v20, 0.0  ;;  %v271_v32 = vmul.f32 %v371_v18, %v371_v18  ;;  %v236_v39 = vsel %vm214_vm3, %v371_v18, 0.0  ;;  %v299_v9 = vsel %vm214_vm3, %v276_v0, 0.0 }
  0xd3   :  { %v154_v21 = vpop.f32.mrf.mxu0  ;;  %v186_v22 = vpop.f32.mrf.mxu1  ;;  %v279_v14 = vmul.f32 %v480_v19, %v480_v19  ;;  %v303_v20 = vsel %vm214_vm3, %v278_v8, 0.0 }
  0xd4   :  { %216 = vst.msk [vmem:[%s590_s2 + $0x8] sm:$0xff] %vm214_vm3, %v154_v21  ;;  %v232_v25 = vsel %vm214_vm3, %v154_v21, 0.0  ;;  %v269_v26 = vmul.f32 %v154_v21, %v154_v21  ;;  %224 = vst.msk [vmem:[%s590_s2 + $0x48] sm:$0xff] %vm214_vm3, %v186_v22  ;;  %v289_v45 = vsel %vm214_vm3, %v271_v32, 0.0  ;;  %v277_v5 = vmul.f32 %v186_v22, %v186_v22 }
  0xd5   :  { %v233_v27 = vadd.f32 %v232_v25, %v231_v24  ;;  %v374_v28 = vpop.f32.mrf.mxu0  ;;  %v501_v29 = vpop.f32.mrf.mxu1  ;;  %v248_v10 = vsel %vm214_vm3, %v186_v22, 0.0  ;;  %v252_v21 = vsel %vm214_vm3, %v480_v19, 0.0  ;;  %v305_v25 = vsel %vm214_vm3, %v279_v14, 0.0 }
  0xd6   :  { %v285_v33 = vsel %vm214_vm3, %v269_v26, 0.0  ;;  %221 = vst.msk [vmem:[%s590_s2 + $0x30] sm:$0xff] %vm214_vm3, %v374_v28  ;;  %229 = vst.msk [vmem:[%s590_s2 + $0x70] sm:$0xff] %vm214_vm3, %v501_v29  ;;  %v274_v51 = vmul.f32 %v374_v28, %v374_v28  ;;  %v242_v57 = vsel %vm214_vm3, %v374_v28, 0.0  ;;  %v301_v16 = vsel %vm214_vm3, %v277_v5, 0.0 }
  0xd7   :  { %v235_v34 = vadd.f32 %v234_v30, %v233_v27  ;;  %v286_v35 = vadd.f32 %v285_v33, %v284_v31  ;;  %v167_v36 = vpop.f32.mrf.mxu0  ;;  %v199_v37 = vpop.f32.mrf.mxu1  ;;  %v282_v30 = vmul.f32 %v501_v29, %v501_v29  ;;  %v258_v19 = vsel %vm214_vm3, %v501_v29, 0.0 }
  0xd8   :  { %219 = vst.msk [vmem:[%s590_s2 + $0x20] sm:$0xff] %vm214_vm3, %v167_v36  ;;  %v272_v40 = vmul.f32 %v167_v36, %v167_v36  ;;  %227 = vst.msk [vmem:[%s590_s2 + $0x60] sm:$0xff] %vm214_vm3, %v199_v37  ;;  %v238_v46 = vsel %vm214_vm3, %v167_v36, 0.0  ;;  %v295_v62 = vsel %vm214_vm3, %v274_v51, 0.0  ;;  %v280_v23 = vmul.f32 %v199_v37, %v199_v37 }
  0xd9   :  { %v288_v41 = vadd.f32 %v287_v38, %v286_v35  ;;  %v237_v42 = vadd.f32 %v236_v39, %v235_v34  ;;  %v375_v43 = vpop.f32.mrf.mxu0  ;;  %v525_v44 = vpop.f32.mrf.mxu1  ;;  %v254_v26 = vsel %vm214_vm3, %v199_v37, 0.0  ;;  %v311_v39 = vsel %vm214_vm3, %v282_v30, 0.0 }
  0xda   :  { %222 = vst.msk [vmem:[%s590_s2 + $0x38] sm:$0xff] %vm214_vm3, %v375_v43  ;;  %230 = vst.msk [vmem:[%s590_s2 + $0x78] sm:$0xff] %vm214_vm3, %v525_v44  ;;  %v291_v52 = vsel %vm214_vm3, %v272_v40, 0.0  ;;  %v275_v58 = vmul.f32 %v375_v43, %v375_v43  ;;  %v244_v63 = vsel %vm214_vm3, %v375_v43, 0.0  ;;  %v307_v31 = vsel %vm214_vm3, %v280_v23, 0.0 }
  0xdb   :  { %v239_v47 = vadd.f32 %v238_v46, %v237_v42  ;;  %v290_v48 = vadd.f32 %v289_v45, %v288_v41  ;;  %v170_v49 = vpop.f32.mrf.mxu0  ;;  %v202_v50 = vpop.f32.mrf.mxu1  ;;  %v283_v35 = vmul.f32 %v525_v44, %v525_v44  ;;  %v260_v40 = vsel %vm214_vm3, %v525_v44, 0.0 }
  0xdc   :  { %220 = vst.msk [vmem:[%s590_s2 + $0x28] sm:$0xff] %vm214_vm3, %v170_v49  ;;  %v240_v53 = vsel %vm214_vm3, %v170_v49, 0.0  ;;  %v273_v54 = vmul.f32 %v170_v49, %v170_v49  ;;  %228 = vst.msk [vmem:[%s590_s2 + $0x68] sm:$0xff] %vm214_vm3, %v202_v50  ;;  %v297_v3 = vsel %vm214_vm3, %v275_v58, 0.0  ;;  %v281_v15 = vmul.f32 %v202_v50, %v202_v50 }
  0xdd   :  { %v292_v55 = vadd.f32 %v291_v52, %v290_v48  ;;  %v241_v56 = vadd.f32 %v240_v53, %v239_v47  ;;  %v256_v32 = vsel %vm214_vm3, %v202_v50, 0.0  ;;  %v313_v43 = vsel %vm214_vm3, %v283_v35, 0.0 }
  0xde   :  { %v293_v59 = vsel %vm214_vm3, %v273_v54, 0.0  ;;  %v309_v36 = vsel %vm214_vm3, %v281_v15, 0.0  ;;  %v321_v48 = vlaneseq }
  0xdf   :  { %v243_v60 = vadd.f32 %v242_v57, %v241_v56  ;;  %v294_v61 = vadd.f32 %v293_v59, %v292_v55 }
  0xe0   :  { %v322_v53 = vshrl.u32 %v321_v48, 7 }
  0xe1   :  { %v245_v1 = vadd.f32 %v244_v63, %v243_v60  ;;  %v296_v2 = vadd.f32 %v295_v62, %v294_v61 }
  0xe2   :  { %vm324_vm4 = vcmp.eq.s32.totalorder %v322_v53, 1  ;;  %vm323_vm5 = vcmp.eq.s32.totalorder %v322_v53, 0 }
  0xe3   :  { %v298_v6 = vadd.f32 %v297_v3, %v296_v2  ;;  %v247_v7 = vadd.f32 %v246_v4, %v245_v1 }
  0xe5   :  { %v249_v11 = vadd.f32 %v248_v10, %v247_v7  ;;  %v300_v12 = vadd.f32 %v299_v9, %v298_v6 }
  0xe7   :  { %v251_v17 = vadd.f32 %v250_v13, %v249_v11  ;;  %v302_v18 = vadd.f32 %v301_v16, %v300_v12 }
  0xe9   :  { %v304_v24 = vadd.f32 %v303_v20, %v302_v18  ;;  %v253_v22 = vadd.f32 %v252_v21, %v251_v17 }
  0xeb   :  { %v255_v27 = vadd.f32 %v254_v26, %v253_v22  ;;  %v306_v28 = vadd.f32 %v305_v25, %v304_v24 }
  0xed   :  { %v308_v33 = vadd.f32 %v307_v31, %v306_v28  ;;  %v257_v34 = vadd.f32 %v256_v32, %v255_v27 }
  0xef   :  { %v259_v37 = vadd.f32 %v258_v19, %v257_v34  ;;  %v310_v38 = vadd.f32 %v309_v36, %v308_v33 }
  0xf1   :  { %v261_v41 = vadd.f32 %v260_v40, %v259_v37  ;;  %v312_v42 = vadd.f32 %v311_v39, %v310_v38 }
  0xf3   :  { %v262_v45 = vrot.slane %v261_v41, 4  ;;  %v314_v46 = vadd.f32 %v313_v43, %v312_v42 }
  0xf5   :  { %v263_v47 = vadd.f32 %v262_v45, %v261_v41  ;;  %v315_v29 = vrot.slane %v314_v46, 4 }
  0xf7   :  { %v264_v49 = vrot.slane %v263_v47, 2  ;;  %v316_v50 = vadd.f32 %v315_v29, %v314_v46 }
  0xf9   :  { %v265_v51 = vadd.f32 %v264_v49, %v263_v47  ;;  %v317_v52 = vrot.slane %v316_v50, 2 }
  0xfb   :  { %v318_v54 = vadd.f32 %v317_v52, %v316_v50  ;;  %v266_v55 = vrot.slane %v265_v51, 1 }
  0xfd   :  { %v319_v56 = vrot.slane %v318_v54, 1  ;;  %v267_v44 = vadd.f32 %v266_v55, %v265_v51 }
  0xff   :  { %v320_v57 = vadd.f32 %v319_v56, %v318_v54 }
 0x101   :  { %v325_v58 = vsel %vm324_vm4, %v320_v57, 0.0 }
 0x102   :  { %v326_v59 = vsel %vm323_vm5, %v267_v44, %v325_v58 }
 0x103   :  { %327 = vst.msk [vmem:[%s591_s3] sm:$0xff] %vm214_vm3, %v326_v59 }

// kernel: detector_forward.12
= control target key start
LH: loop header
LB: loop body
LE: loop exit
PB: predicated region body
PF: predicated region fallthrough
CT: control target
= control target key end

     0   :  { %vm44_vm0 = vcmask 130048   ;;  %s105_s0 = inlined_call_operand.vmem [shape: f32[32,16], index: 0, kind: input, shape index: {}]   ;;  %s106_s1 = inlined_call_operand.vmem [shape: f32[1,16], index: 1, kind: input, shape index: {}]   ;;  %s107_s2 = inlined_call_operand.vmem [shape: f32[1,16], index: 2, kind: input, shape index: {}]   ;;  %s108_s3 = inlined_call_operand.vmem [shape: f32[32,16], index: 3, kind: output, shape index: {}]  }
   0x1   :  { %v14_v0 = vld [vmem:[%s105_s0] sm:$0xff]  ;;  %v15_v4 = vld [vmem:[%s105_s0 + $0x8] sm:$0xff]  ;;  %v16_v5 = vld [vmem:[%s105_s0 + $0x10] sm:$0xff] }
   0x2   :  { %v53_v1 = vld [vmem:[%s106_s1] ss:$0 sm:$0xff]  ;;  %v17_v6 = vld [vmem:[%s105_s0 + $0x18] sm:$0xff] }
   0x3   :  { %v54_v2 = vld [vmem:[%s107_s2] ss:$0 sm:$0xff]  ;;  %v25_v3 = vmul.f32 %v53_v1, %v14_v0  ;;  %v26_v7 = vmul.f32 %v53_v1, %v15_v4  ;;  %v27_v8 = vmul.f32 %v53_v1, %v16_v5  ;;  %v28_v9 = vmul.f32 %v53_v1, %v17_v6 }
   0x5   :  { %v36_v10 = vadd.f32 %v54_v2, %v25_v3  ;;  %v37_v11 = vadd.f32 %v54_v2, %v26_v7  ;;  %v38_v12 = vadd.f32 %v54_v2, %v27_v8  ;;  %v39_v13 = vadd.f32 %v54_v2, %v28_v9 }
   0x7   :  { %v40_v14 = vmax.f32 %v36_v10, 0.0  ;;  %v41_v15 = vmax.f32 %v37_v11, 0.0  ;;  %v42_v16 = vmax.f32 %v38_v12, 0.0  ;;  %v43_v17 = vmax.f32 %v39_v13, 0.0 }
   0x9   :  { %45 = vst.msk [vmem:[%s108_s3] sm:$0xff] %vm44_vm0, %v40_v14  ;;  %46 = vst.msk [vmem:[%s108_s3 + $0x8] sm:$0xff] %vm44_vm0, %v41_v15 }
   0xa   :  { %47 = vst.msk [vmem:[%s108_s3 + $0x10] sm:$0xff] %vm44_vm0, %v42_v16  ;;  %48 = vst.msk [vmem:[%s108_s3 + $0x18] sm:$0xff] %vm44_vm0, %v43_v17 }

// kernel: detector_forward.11
= control target key start
LH: loop header
LB: loop body
LE: loop exit
PB: predicated region body
PF: predicated region fallthrough
CT: control target
= control target key end

     0   :  { %vm71_vm0 = vcmask 1043456   ;;  %vm64_vm1 = vcmask 588800   ;;  %vm124_vm2 = vcmask 130048   ;;  %v159_v33 = vlaneseq  ;;  %s281_s1 = inlined_call_operand.vmem [shape: bf16[72,16], index: 1, kind: input, shape index: {}]   ;;  %s282_s0 = inlined_call_operand.vmem [shape: bf16[32,72], index: 0, kind: input, shape index: {}]   ;;  %s283_s2 = inlined_call_operand.vmem [shape: f32[32,16], index: 2, kind: output, shape index: {0}]   ;;  %s284_s3 = inlined_call_operand.vmem [shape: f32[1,8,16], index: 3, kind: output, shape index: {1}]  }
   0x1   :  { %v205_v0 = vld [vmem:[%s281_s1 + $0x20] ss:$0 sps:$4 sm:$0xff]   ;;  %v206_v1 = vld [vmem:[%s281_s1 + $0x18] sm:$0xff]   ;;  %v207_v3 = vld [vmem:[%s281_s1 + $0x10] sm:$0xff]  }
   0x2   :  { %204 = vmatprep.subr.msk.bf16.mxu0 %vm71_vm0, %v205_v0  ;;  %v73_v2 = vsel %vm71_vm0, %v205_v0, 0  ;;  %v210_v4 = vld [vmem:[%s282_s0] sm:$0xff]   ;;  %v208_v5 = vld [vmem:[%s281_s1 + $0x8] sm:$0xff]   ;;  %v160_v38 = vshrl.u32 %v159_v33, 7 }
   0x3   :  { %191 = vmatpush3.bf16.msra.mxu0 %v73_v2  ;;  %200 = vmatprep.mubr.msk.bf16.mxu0 %vm64_vm1, %v210_v4  ;;  %v209_v6 = vld [vmem:[%s281_s1] sm:$0xff]   ;;  %v211_v7 = vld [vmem:[%s282_s0 + $0x8] sm:$0xff]  }
   0x4   :  { %192 = vmatprep.subr.bf16.mxu0 %v206_v1  ;;  %vm162_vm3 = vcmp.eq.s32.totalorder %v160_v38, 1  ;;  %vm161_vm4 = vcmp.eq.s32.totalorder %v160_v38, 0 }
   0x7   :  { %193 = vmatpush3.bf16.msra.mxu0 %v206_v1 }
   0x8   :  { %194 = vmatprep.subr.bf16.mxu0 %v207_v3 }
   0xb   :  { %195 = vmatpush3.bf16.msra.mxu0 %v207_v3 }
   0xc   :  { %196 = vmatprep.subr.bf16.mxu0 %v208_v5 }
   0xf   :  { %197 = vmatpush3.bf16.msra.mxu0 %v208_v5 }
  0x10   :  { %198 = vmatprep.subr.bf16.mxu0 %v209_v6 }
  0x13   :  { %199 = vmatpush3.bf16.msra.mxu0 %v209_v6 }
  0x16   :  { %201 = vmatmul.mubr.msk.bf16.vlgmr.msra.gmra.mxu0 %vm64_vm1, %v211_v7 }
  0xd6   :  { %v202_v8 = vpop.f32.mrf.mxu0 }
  0xd7   :  { %127 = vst.msk [vmem:[%s283_s2 + $0x10] sm:$0xff] %vm124_vm2, %v202_v8  ;;  %v144_v13 = vmul.f32 %v202_v8, %v202_v8  ;;  %v132_v18 = vsel %vm124_vm2, %v202_v8, 0.0 }
  0xd8   :  { %v109_v9 = vpop.f32.mrf.mxu0 }
  0xd9   :  { %125 = vst.msk [vmem:[%s283_s2] sm:$0xff] %vm124_vm2, %v109_v9  ;;  %v142_v11 = vmul.f32 %v109_v9, %v109_v9  ;;  %v129_v14 = vsel %vm124_vm2, %v109_v9, 0.0  ;;  %v149_v24 = vsel %vm124_vm2, %v144_v13, 0.0 }
  0xda   :  { %v203_v10 = vpop.f32.mrf.mxu0 }
  0xdb   :  { %128 = vst.msk [vmem:[%s283_s2 + $0x18] sm:$0xff] %vm124_vm2, %v203_v10  ;;  %v146_v19 = vsel %vm124_vm2, %v142_v11, 0.0  ;;  %v145_v20 = vmul.f32 %v203_v10, %v203_v10  ;;  %v134_v25 = vsel %vm124_vm2, %v203_v10, 0.0 }
  0xdc   :  { %v112_v12 = vpop.f32.mrf.mxu0 }
  0xdd   :  { %126 = vst.msk [vmem:[%s283_s2 + $0x8] sm:$0xff] %vm124_vm2, %v112_v12  ;;  %v130_v15 = vsel %vm124_vm2, %v112_v12, 0.0  ;;  %v143_v16 = vmul.f32 %v112_v12, %v112_v12  ;;  %v151_v28 = vsel %vm124_vm2, %v145_v20, 0.0 }
  0xde   :  { %v131_v17 = vadd.f32 %v130_v15, %v129_v14 }
  0xdf   :  { %v147_v21 = vsel %vm124_vm2, %v143_v16, 0.0 }
  0xe0   :  { %v133_v22 = vadd.f32 %v132_v18, %v131_v17  ;;  %v148_v23 = vadd.f32 %v147_v21, %v146_v19 }
  0xe2   :  { %v135_v26 = vadd.f32 %v134_v25, %v133_v22  ;;  %v150_v27 = vadd.f32 %v149_v24, %v148_v23 }
  0xe4   :  { %v136_v29 = vrot.slane %v135_v26, 4  ;;  %v152_v30 = vadd.f32 %v151_v28, %v150_v27 }
  0xe6   :  { %v137_v31 = vadd.f32 %v136_v29, %v135_v26  ;;  %v153_v32 = vrot.slane %v152_v30, 4 }
  0xe8   :  { %v138_v34 = vrot.slane %v137_v31, 2  ;;  %v154_v35 = vadd.f32 %v153_v32, %v152_v30 }
  0xea   :  { %v139_v36 = vadd.f32 %v138_v34, %v137_v31  ;;  %v155_v37 = vrot.slane %v154_v35, 2 }
  0xec   :  { %v156_v39 = vadd.f32 %v155_v37, %v154_v35  ;;  %v140_v40 = vrot.slane %v139_v36, 1 }
  0xee   :  { %v157_v41 = vrot.slane %v156_v39, 1  ;;  %v141_v43 = vadd.f32 %v140_v40, %v139_v36 }
  0xf0   :  { %v158_v42 = vadd.f32 %v157_v41, %v156_v39 }
  0xf2   :  { %v163_v44 = vsel %vm162_vm3, %v158_v42, 0.0 }
  0xf3   :  { %v164_v45 = vsel %vm161_vm4, %v141_v43, %v163_v44 }
  0xf4   :  { %165 = vst.msk [vmem:[%s284_s3] sm:$0xff] %vm124_vm2, %v164_v45 }

// kernel: detector_forward.14
= control target key start
LH: loop header
LB: loop body
LE: loop exit
PB: predicated region body
PF: predicated region fallthrough
CT: control target
= control target key end

     0   :  { %vm55_vm0 = vcmask 130048   ;;  %s133_s0 = inlined_call_operand.vmem [shape: f32[32,16], index: 0, kind: input, shape index: {}]   ;;  %s134_s1 = inlined_call_operand.vmem [shape: f32[1,16], index: 1, kind: input, shape index: {}]   ;;  %s135_s2 = inlined_call_operand.vmem [shape: f32[1,16], index: 2, kind: input, shape index: {}]   ;;  %s136_s3 = inlined_call_operand.vmem [shape: f32[32,16], index: 3, kind: input, shape index: {}]   ;;  %s137_s4 = inlined_call_operand.vmem [shape: f32[32,16], index: 4, kind: output, shape index: {}]  }
   0x1   :  { %v17_v0 = vld [vmem:[%s133_s0] sm:$0xff]  ;;  %v18_v4 = vld [vmem:[%s133_s0 + $0x8] sm:$0xff]  ;;  %v19_v6 = vld [vmem:[%s133_s0 + $0x10] sm:$0xff] }
   0x2   :  { %v64_v1 = vld [vmem:[%s134_s1] ss:$0 sm:$0xff]  ;;  %v20_v7 = vld [vmem:[%s133_s0 + $0x18] sm:$0xff]  ;;  %v48_v14 = vld [vmem:[%s136_s3 + $0x8] sm:$0xff] }
   0x3   :  { %v65_v2 = vld [vmem:[%s135_s2] ss:$0 sm:$0xff]  ;;  %v28_v3 = vmul.f32 %v64_v1, %v17_v0  ;;  %v29_v5 = vmul.f32 %v64_v1, %v18_v4  ;;  %v30_v9 = vmul.f32 %v64_v1, %v19_v6  ;;  %v31_v10 = vmul.f32 %v64_v1, %v20_v7  ;;  %v49_v18 = vld [vmem:[%s136_s3 + $0x10] sm:$0xff]  ;;  %v50_v19 = vld [vmem:[%s136_s3 + $0x18] sm:$0xff] }
   0x4   :  { %v47_v11 = vld [vmem:[%s136_s3] sm:$0xff] }
   0x5   :  { %v39_v8 = vadd.f32 %v65_v2, %v28_v3  ;;  %v40_v12 = vadd.f32 %v65_v2, %v29_v5  ;;  %v41_v15 = vadd.f32 %v65_v2, %v30_v9  ;;  %v42_v16 = vadd.f32 %v65_v2, %v31_v10 }
   0x7   :  { %v43_v13 = vmax.f32 %v39_v8, 0.0  ;;  %v44_v17 = vmax.f32 %v40_v12, 0.0  ;;  %v45_v21 = vmax.f32 %v41_v15, 0.0  ;;  %v46_v22 = vmax.f32 %v42_v16, 0.0 }
   0x9   :  { %v51_v20 = vadd.f32 %v47_v11, %v43_v13  ;;  %v52_v23 = vadd.f32 %v48_v14, %v44_v17  ;;  %v53_v24 = vadd.f32 %v49_v18, %v45_v21  ;;  %v54_v25 = vadd.f32 %v50_v19, %v46_v22 }
   0xb   :  { %56 = vst.msk [vmem:[%s137_s4] sm:$0xff] %vm55_vm0, %v51_v20  ;;  %57 = vst.msk [vmem:[%s137_s4 + $0x8] sm:$0xff] %vm55_vm0, %v52_v23 }
   0xc   :  { %58 = vst.msk [vmem:[%s137_s4 + $0x10] sm:$0xff] %vm55_vm0, %v53_v24  ;;  %59 = vst.msk [vmem:[%s137_s4 + $0x18] sm:$0xff] %vm55_vm0, %v54_v25 }

// kernel: detector_forward.17
= control target key start
LH: loop header
LB: loop body
LE: loop exit
PB: predicated region body
PF: predicated region fallthrough
CT: control target
= control target key end

     0   :  { %vm36_vm0 = vcmask 130048   ;;  %v92_v7 = vlaneseq  ;;  %s267_s1 = inlined_call_operand.vmem [shape: bf16[16,16], index: 1, kind: input, shape index: {}]   ;;  %s268_s0 = inlined_call_operand.vmem [shape: f32[32,16], index: 0, kind: input, shape index: {}]   ;;  %s269_s2 = inlined_call_operand.vmem [shape: f32[1,16], index: 2, kind: input, shape index: {}]   ;;  %s270_s3 = inlined_call_operand.vmem [shape: f32[32,16], index: 3, kind: output, shape index: {}]  }
   0x1   :  { %v166_v0 = vld [vmem:[%s267_s1] sm:$0xff]   ;;  %v16_v2 = vld [vmem:[%s268_s0 + $0x8] sm:$0xff]  ;;  %v17_v3 = vld [vmem:[%s268_s0 + $0x10] sm:$0xff] }
   0x2   :  { %v15_v1 = vld [vmem:[%s268_s0] sm:$0xff]  ;;  %160 = vmatprep.subr.bf16.mxu0 %v166_v0  ;;  %v18_v5 = vld [vmem:[%s268_s0 + $0x18] sm:$0xff]  ;;  %v93_v10 = vand.u32 127, %v92_v7 }
   0x3   :  { %v19_v4 = vpack.c.bf16 %v16_v2, %v15_v1  ;;  %161 = vmatpush3.bf16.msra.mxu0 %v166_v0  ;;  %v20_v6 = vpack.c.bf16 %v18_v5, %v17_v3  ;;  %v149_v8 = vld [vmem:[%s269_s2] ss:$0 sm:$0xff] }
   0x4   :  { %vm94_vm1 = vcmp.ge.s32.totalorder %v93_v10, 14  ;;  %vm95_vm2 = vcmp.lt.s32.totalorder %v93_v10, 16 }
   0x5   :  { %162 = vmatprep.mubr.msk.bf16.mxu0 %vm36_vm0, %v19_v4  ;;  %vm231_vm3 = vmand %vm94_vm1, %vm95_vm2 }
   0x6   :  { %163 = vmatmul.mubr.msk.bf16.vlgmr.msra.gmra.mxu0 %vm36_vm0, %v20_v6 }
  0xc6   :  { %v164_v9 = vpop.f32.mrf.mxu0 }
  0xc7   :  { %v86_v11 = vadd.f32 %v164_v9, %v149_v8 }
  0xc8   :  { %v77_v12 = vpop.f32.mrf.mxu0 }
  0xc9   :  { %v155_v13 = vmul.f32 -1.442695, %v86_v11  ;;  %v78_v14 = vadd.f32 %v149_v8, %v77_v12  ;;  %v99_v23 = vsel %vm231_vm3, %v86_v11, 0.0 }
  0xca   :  { %v165_v15 = vpop.f32.mrf.mxu0  ;;  %v105_v25 = vmul.f32 1.442695, %v99_v23 }
  0xcb   :  { %167 = vpow2.f32 %v155_v13  ;;  %v153_v16 = vmul.f32 -1.442695, %v78_v14  ;;  %v89_v17 = vadd.f32 %v165_v15, %v149_v8  ;;  %v97_v24 = vsel %vm231_vm3, %v78_v14, 0.0 }
  0xcc   :  { %v80_v18 = vpop.f32.mrf.mxu0  ;;  %v101_v27 = vmul.f32 1.442695, %v97_v24 }
  0xcd   :  { %169 = vpow2.f32 %v153_v16  ;;  %v156_v20 = vmul.f32 -1.442695, %v89_v17  ;;  %v81_v21 = vadd.f32 %v149_v8, %v80_v18  ;;  %v100_v26 = vsel %vm231_vm3, %v89_v17, 0.0 }
  0xce   :  { %v107_v29 = vmul.f32 1.442695, %v100_v26 }
  0xcf   :  { %171 = vpow2.f32 %v156_v20  ;;  %v154_v22 = vmul.f32 -1.442695, %v81_v21  ;;  %v98_v28 = vsel %vm231_vm3, %v81_v21, 0.0 }
  0xd0   :  { %v103_v31 = vmul.f32 1.442695, %v98_v28 }
  0xd1   :  { %173 = vpow2.f32 %v154_v22 }
  0xd2   :  { %175 = vpow2.f32 %v105_v25 }
  0xd3   :  { %177 = vpow2.f32 %v101_v27 }
  0xd4   :  { %179 = vpow2.f32 %v107_v29 }
  0xd8   :  { %v168_v30 = vpop.eup %167 }
  0xd9   :  { %v127_v32 = vadd.f32 1.0, %v168_v30 }
  0xda   :  { %v170_v33 = vpop.eup %169 }
  0xdb   :  { %181 = vrcp.f32 %v127_v32  ;;  %v125_v34 = vadd.f32 1.0, %v170_v33 }
  0xdc   :  { %v172_v35 = vpop.eup %171  ;;  %183 = vpow2.f32 %v103_v31 }
  0xdd   :  { %185 = vrcp.f32 %v125_v34  ;;  %v128_v36 = vadd.f32 1.0, %v172_v35 }
  0xde   :  { %v174_v37 = vpop.eup %173 }
  0xdf   :  { %187 = vrcp.f32 %v128_v36  ;;  %v126_v38 = vadd.f32 1.0, %v174_v37  ;;  %v176_v39 = vpop.eup %175 }
  0xe0   :  { %v178_v40 = vpop.eup %177  ;;  %v111_v42 = vmul.f32 0.3, %v176_v39 }
  0xe1   :  { %189 = vrcp.f32 %v126_v38  ;;  %v180_v41 = vpop.eup %179  ;;  %v109_v46 = vmul.f32 0.3, %v178_v40 }
  0xe2   :  { %v112_v49 = vmul.f32 0.3, %v180_v41 }
  0xe8   :  { %v182_v43 = vpop.eup %181 }
  0xe9   :  { %v184_v44 = vpop.eup %183  ;;  %v139_v45 = vsel %vm231_vm3, %v111_v42, %v182_v43 }
  0xea   :  { %v186_v47 = vpop.eup %185  ;;  %143 = vst.msk [vmem:[%s270_s3 + $0x10] sm:$0xff] %vm36_vm0, %v139_v45  ;;  %v110_v52 = vmul.f32 0.3, %v184_v44 }
  0xeb   :  { %v137_v48 = vsel %vm231_vm3, %v109_v46, %v186_v47 }
  0xec   :  { %v188_v50 = vpop.eup %187  ;;  %141 = vst.msk [vmem:[%s270_s3] sm:$0xff] %vm36_vm0, %v137_v48 }
  0xed   :  { %v140_v51 = vsel %vm231_vm3, %v112_v49, %v188_v50 }
  0xee   :  { %v190_v53 = vpop.eup %189  ;;  %144 = vst.msk [vmem:[%s270_s3 + $0x18] sm:$0xff] %vm36_vm0, %v140_v51 }
  0xef   :  { %v138_v54 = vsel %vm231_vm3, %v110_v52, %v190_v53 }
  0xf0   :  { %142 = vst.msk [vmem:[%s270_s3 + $0x8] sm:$0xff] %vm36_vm0, %v138_v54 }

// kernel: detector_forward.13
= control target key start
LH: loop header
LB: loop body
LE: loop exit
PB: predicated region body
PF: predicated region fallthrough
CT: control target
= control target key end

     0   :  { %v262_v0 = vmov 0   ;;  %vm108_vm0 = vcmask 130048   ;;  %v198_v43 = vlaneseq  ;;  %s352_s1 = inlined_call_operand.vmem [shape: bf16[144,16], index: 1, kind: input, shape index: {}]   ;;  %s353_s0 = inlined_call_operand.vmem [shape: bf16[32,144], index: 0, kind: input, shape index: {}]   ;;  %s354_s2 = inlined_call_operand.vmem [shape: f32[32,16], index: 2, kind: output, shape index: {0}]   ;;  %s355_s3 = inlined_call_operand.vmem [shape: f32[1,8,16], index: 3, kind: output, shape index: {1}]  }
   0x1   :  { %115 = vmatprep.subr.bf16.mxu0 %v262_v0  ;;  %228 = vmatprep.subr.bf16.mxu1 %v262_v0  ;;  %v247_v1 = vld [vmem:[%s352_s1 + $0x38] sm:$0xff]   ;;  %v248_v2 = vld [vmem:[%s352_s1 + $0x30] sm:$0xff]   ;;  %v249_v3 = vld [vmem:[%s352_s1 + $0x28] sm:$0xff]  }
   0x2   :  { %116 = vmatpush1.bf16.msra.mxu0 %v247_v1  ;;  %237 = vmatpush1.bf16.msra.mxu1 %v247_v1  ;;  %v250_v4 = vld [vmem:[%s352_s1 + $0x20] sm:$0xff]   ;;  %v261_v6 = vld [vmem:[%s353_s0 + $0x14] ss:$8 sps:$4 sm:$0xff]   ;;  %v253_v9 = vld [vmem:[%s352_s1 + $0x8] sm:$0xff]   ;;  %v199_v48 = vshrl.u32 %v198_v43, 7 }
   0x3   :  { %117 = vmatprep.subr.bf16.mxu0 %v262_v0  ;;  %229 = vmatprep.subr.bf16.mxu1 %v262_v0  ;;  %v258_v5 = vld [vmem:[%s353_s0 + $0x4] ss:$8 sps:$4 sm:$0xff]   ;;  %v251_v7 = vld [vmem:[%s352_s1 + $0x18] sm:$0xff]   ;;  %v252_v8 = vld [vmem:[%s352_s1 + $0x10] sm:$0xff]  }
   0x4   :  { %226 = vmatprep.mubr.msk.bf16.mxu0 %vm108_vm0, %v258_v5  ;;  %227 = vmatprep.mubr.msk.bf16.mxu1 %vm108_vm0, %v261_v6  ;;  %v254_v10 = vld [vmem:[%s352_s1] sm:$0xff]   ;;  %v259_v13 = vld [vmem:[%s353_s0 + $0x10] ss:$8 sps:$4 sm:$0xff]   ;;  %vm201_vm1 = vcmp.eq.s32.totalorder %v199_v48, 1  ;;  %vm200_vm2 = vcmp.eq.s32.totalorder %v199_v48, 0 }
   0x5   :  { %v255_v11 = vld [vmem:[%s352_s1 + $0x40] sm:$0xff]  }
   0x6   :  { %118 = vmatpush1.bf16.msra.mxu0 %v248_v2  ;;  %238 = vmatpush1.bf16.msra.mxu1 %v248_v2  ;;  %v256_v12 = vld [vmem:[%s353_s0] ss:$8 sps:$4 sm:$0xff]  }
   0x7   :  { %119 = vmatprep.subr.bf16.mxu0 %v262_v0  ;;  %230 = vmatprep.subr.bf16.mxu1 %v262_v0 }
   0xa   :  { %120 = vmatpush1.bf16.msra.mxu0 %v249_v3  ;;  %239 = vmatpush1.bf16.msra.mxu1 %v249_v3 }
   0xb   :  { %121 = vmatprep.subr.bf16.mxu0 %v262_v0  ;;  %231 = vmatprep.subr.bf16.mxu1 %v262_v0 }
   0xe   :  { %122 = vmatpush1.bf16.msra.mxu0 %v250_v4  ;;  %240 = vmatpush1.bf16.msra.mxu1 %v250_v4 }
   0xf   :  { %123 = vmatprep.subr.bf16.mxu0 %v262_v0  ;;  %232 = vmatprep.subr.bf16.mxu1 %v262_v0 }
  0x12   :  { %124 = vmatpush1.bf16.msra.mxu0 %v251_v7  ;;  %241 = vmatpush1.bf16.msra.mxu1 %v251_v7 }
  0x13   :  { %125 = vmatprep.subr.bf16.mxu0 %v262_v0  ;;  %233 = vmatprep.subr.bf16.mxu1 %v262_v0 }
  0x16   :  { %126 = vmatpush1.bf16.msra.mxu0 %v252_v8  ;;  %242 = vmatpush1.bf16.msra.mxu1 %v252_v8 }
  0x17   :  { %127 = vmatprep.subr.bf16.mxu0 %v262_v0  ;;  %234 = vmatprep.subr.bf16.mxu1 %v262_v0 }
  0x1a   :  { %128 = vmatpush1.bf16.msra.mxu0 %v253_v9  ;;  %243 = vmatpush1.bf16.msra.mxu1 %v253_v9 }
  0x1b   :  { %129 = vmatprep.subr.bf16.mxu0 %v262_v0  ;;  %235 = vmatprep.subr.bf16.mxu1 %v262_v0 }
  0x1e   :  { %130 = vmatpush1.bf16.msra.mxu0 %v254_v10  ;;  %244 = vmatpush1.bf16.msra.mxu1 %v254_v10 }
  0x1f   :  { %145 = vmatprep.subr.bf16.mxu0 %v262_v0  ;;  %236 = vmatprep.subr.bf16.mxu1 %v262_v0 }
  0x22   :  { %146 = vmatpush2.bf16.msra.mxu0 %v255_v11  ;;  %245 = vmatpush2.bf16.msra.mxu1 %v255_v11 }
  0x25   :  { %148 = vmatmul.mubr.bf16.vlgmr.msra.gmra.mxu0 %v256_v12  ;;  %156 = vmatmul.mubr.bf16.vlgmr.msra.gmra.mxu1 %v259_v13 }
  0xe5   :  { %v149_v14 = vpop.f32.mrf.mxu0  ;;  %v157_v15 = vpop.f32.mrf.mxu1 }
  0xe6   :  { %164 = vst.msk [vmem:[%s354_s2] sm:$0xff] %vm108_vm0, %v149_v14  ;;  %166 = vst.msk [vmem:[%s354_s2 + $0x10] sm:$0xff] %vm108_vm0, %v157_v15  ;;  %v181_v18 = vmul.f32 %v149_v14, %v149_v14  ;;  %v168_v21 = vsel %vm108_vm0, %v149_v14, 0.0  ;;  %v183_v22 = vmul.f32 %v157_v15, %v157_v15  ;;  %v171_v29 = vsel %vm108_vm0, %v157_v15, 0.0 }
  0xe7   :  { %v151_v16 = vpop.f32.mrf.mxu0  ;;  %v159_v17 = vpop.f32.mrf.mxu1 }
  0xe8   :  { %v185_v28 = vsel %vm108_vm0, %v181_v18, 0.0  ;;  %v188_v34 = vsel %vm108_vm0, %v183_v22, 0.0 }
  0xe9   :  { %v152_v19 = vpop.f32.mrf.mxu0  ;;  %v160_v20 = vpop.f32.mrf.mxu1 }
  0xea   :  { %165 = vst.msk [vmem:[%s354_s2 + $0x8] sm:$0xff] %vm108_vm0, %v152_v19  ;;  %v169_v23 = vsel %vm108_vm0, %v152_v19, 0.0  ;;  %v182_v24 = vmul.f32 %v152_v19, %v152_v19  ;;  %167 = vst.msk [vmem:[%s354_s2 + $0x18] sm:$0xff] %vm108_vm0, %v160_v20  ;;  %v184_v31 = vmul.f32 %v160_v20, %v160_v20  ;;  %v173_v35 = vsel %vm108_vm0, %v160_v20, 0.0 }
  0xeb   :  { %v170_v25 = vadd.f32 %v169_v23, %v168_v21  ;;  %v154_v26 = vpop.f32.mrf.mxu0  ;;  %v162_v27 = vpop.f32.mrf.mxu1 }
  0xec   :  { %v186_v30 = vsel %vm108_vm0, %v182_v24, 0.0  ;;  %v190_v38 = vsel %vm108_vm0, %v184_v31, 0.0 }
  0xed   :  { %v187_v32 = vadd.f32 %v186_v30, %v185_v28  ;;  %v172_v33 = vadd.f32 %v171_v29, %v170_v25 }
  0xef   :  { %v174_v36 = vadd.f32 %v173_v35, %v172_v33  ;;  %v189_v37 = vadd.f32 %v188_v34, %v187_v32 }
  0xf1   :  { %v175_v39 = vrot.slane %v174_v36, 4  ;;  %v191_v40 = vadd.f32 %v190_v38, %v189_v37 }
  0xf3   :  { %v176_v41 = vadd.f32 %v175_v39, %v174_v36  ;;  %v192_v42 = vrot.slane %v191_v40, 4 }
  0xf5   :  { %v177_v44 = vrot.slane %v176_v41, 2  ;;  %v193_v45 = vadd.f32 %v192_v42, %v191_v40 }
  0xf7   :  { %v178_v46 = vadd.f32 %v177_v44, %v176_v41  ;;  %v194_v47 = vrot.slane %v193_v45, 2 }
  0xf9   :  { %v195_v49 = vadd.f32 %v194_v47, %v193_v45  ;;  %v179_v50 = vrot.slane %v178_v46, 1 }
  0xfb   :  { %v196_v51 = vrot.slane %v195_v49, 1  ;;  %v180_v53 = vadd.f32 %v179_v50, %v178_v46 }
  0xfd   :  { %v197_v52 = vadd.f32 %v196_v51, %v195_v49 }
  0xff   :  { %v202_v54 = vsel %vm201_vm1, %v197_v52, 0.0 }
 0x100   :  { %v203_v55 = vsel %vm200_vm2, %v180_v53, %v202_v54 }
 0x101   :  { %204 = vst.msk [vmem:[%s355_s3] sm:$0xff] %vm108_vm0, %v203_v55 }

</bundles_post_ra>
